<compile_context>
chip_gen: v7x
topology: tpu7x:2x2x1
jax: 0.10.0
libtpu: 0.0.40
codegen_flags: <defaults>
</compile_context>

<pallas_src>
import functools
import math

import jax
import jax.numpy as jnp
import numpy as np
from jax.experimental import pallas as pl
from jax.experimental.pallas import tpu as pltpu


# --------------------------------------------------------------------------------
# small helpers
# --------------------------------------------------------------------------------
def _cpad(c):
    """Pad a channel count up to a lane-dense multiple of 128."""
    return ((c + 127) // 128) * 128


def _pad_last(a, target):
    pad = target - a.shape[-1]
    if pad <= 0:
        return a
    widths = [(0, 0)] * (a.ndim - 1) + [(0, pad)]
    return jnp.pad(a, widths)


def _pick_tile(L, cap=512):
    """Largest length tile <= cap that divides L (multiple of 8), else whole L."""
    if L <= cap:
        return L
    for t in range(cap, 7, -8):
        if L % t == 0:
            return t
    return L


# --------------------------------------------------------------------------------
# fused layer kernel
# --------------------------------------------------------------------------------
def _conv_bn_kernel(x_ref, w_ref, b_ref, scl_ref, sft_ref, *rest,
                    TL, L_in, in_act, upsample):
    """[prev BN+ReLU] -> [x2 nearest upsample] -> Conv1d(3,1,1) -> batch stats.

    x_ref  : (1, L_in, Cin)   previous layer's pre-BN conv output (or raw input), f32
    w_ref  : (3*Cin, Cout)    conv weight, tap-major packed, bf16
    b_ref  : (1, Cout)        conv bias, f32
    scl_ref: (1, Cin)         folded BN scale of the previous layer (gamma*rsqrt(var+eps))
    sft_ref: (1, Cin)         folded BN shift of the previous layer (beta - mean*scale)
    dup_ref: (TL, TL//2)      0/1 nearest-upsample duplication matrix (upsample only), bf16
    o_ref  : (1, TL, Cout)    this layer's conv(+bias) output (pre-BN), f32, lane-dense
    st_ref : (1, 2, Cout)     per-batch [sum, sum_sq] accumulated over the length tiles
    """
    if upsample:
        dup_ref, o_ref, st_ref = rest
    else:
        o_ref, st_ref = rest

    l = pl.program_id(1)

    def act(v):  # previous layer's BatchNorm + ReLU, fused here, kept in f32 (VPU)
        if in_act:
            v = jnp.maximum(v * scl_ref[...] + sft_ref[...], 0.0)
        return v

    if upsample:
        half = TL // 2
        sh = l * half                                   # start row at half resolution
        if half % 8 == 0:
            sh = pl.multiple_of(sh, 8)                  # sublane-aligned slice start
        xh = act(x_ref[0, pl.ds(sh, half), :])                              # (half, Cin)
        prev = act(x_ref[0, pl.ds(jnp.maximum(sh - 1, 0), 1), :])           # (1, Cin)
        nxt = act(x_ref[0, pl.ds(jnp.minimum(sh + half, L_in - 1), 1), :])  # (1, Cin)
        prev = jnp.where(sh > 0, prev, 0.0)             # conv zero-padding, fused
        nxt = jnp.where(sh + half < L_in, nxt, 0.0)
        # Nearest-x2 upsample fused in-kernel: u[i] = xh[i // 2], expressed as a 0/1
        # duplication matmul (MXU has plenty of slack in this HBM-bound workload).
        u = jnp.dot(dup_ref[...], xh.astype(jnp.bfloat16),
                    preferred_element_type=jnp.float32)                     # (TL, Cin)
    else:
        s = l * TL                                      # start row at full resolution
        if TL % 8 == 0:
            s = pl.multiple_of(s, 8)
        u = act(x_ref[0, pl.ds(s, TL), :])                                  # (TL, Cin)
        prev = act(x_ref[0, pl.ds(jnp.maximum(s - 1, 0), 1), :])
        nxt = act(x_ref[0, pl.ds(jnp.minimum(s + TL, L_in - 1), 1), :])
        prev = jnp.where(s > 0, prev, 0.0)
        nxt = jnp.where(s + TL < L_in, nxt, 0.0)

    # Three conv taps fused into a single K=3*Cin MXU matmul; the +/-1 halo rows are
    # assembled in-register (no extra HBM traffic, no per-tap matmuls).
    t0 = jnp.concatenate([prev, u[:TL - 1]], axis=0)    # rows p-1
    t2 = jnp.concatenate([u[1:], nxt], axis=0)          # rows p+1
    x3 = jnp.concatenate([t0, u, t2], axis=1).astype(jnp.bfloat16)          # (TL, 3*Cin)

    acc = jnp.dot(x3, w_ref[...], preferred_element_type=jnp.float32)       # (TL, Cout)
    acc = acc + b_ref[...]
    o_ref[0] = acc                                      # lane-dense store (Cout % 128 == 0)

    # BatchNorm batch statistics (single pass: sum and sum-of-squares), accumulated
    # across the "arbitrary" length grid axis; finalized per-channel in the wrapper.
    upd = jnp.concatenate(
        [jnp.sum(acc, axis=0, keepdims=True),
         jnp.sum(acc * acc, axis=0, keepdims=True)], axis=0)                # (2, Cout)

    @pl.when(l == 0)
    def _():
        st_ref[0] = upd

    @pl.when(l > 0)
    def _():
        st_ref[0] = st_ref[0] + upd


def conv_layer(x, layer, *, in_scale=None, in_shift=None, upsample=False):
    """One fused DownLayer / MidLayer / UpLayer / out-conv step.

    x: (B, L_in, Cin_pad) f32 = previous layer's pre-BN output (or the raw input).
    Returns (y, stats): y = pre-BN conv output (B, L_out, Cout_pad) f32,
    stats = per-batch [sum, sumsq] per channel, (B, 2, Cout_pad).
    """
    B, L_in, cin_p = x.shape
    cout_p = layer["w"].shape[1]
    L_out = 2 * L_in if upsample else L_in
    TL = _pick_tile(L_out)
    n_lt = L_out // TL
    half = TL // 2

    in_act = in_scale is not None
    if not in_act:
        in_scale = jnp.ones((1, cin_p), jnp.float32)
        in_shift = jnp.zeros((1, cin_p), jnp.float32)
    w_bf = layer["w"].astype(jnp.bfloat16)              # MXU-native operand dtype

    kern = functools.partial(_conv_bn_kernel, TL=TL, L_in=L_in,
                             in_act=in_act, upsample=upsample)

    operands = [x, w_bf, layer["b"], in_scale, in_shift]
    in_specs = [
        # Full-length input per batch element: the block index is constant along the
        # length grid axis so it is fetched once per batch and reused across all L
        # tiles (fine while L*C*4B is a small fraction of VMEM).
        pl.BlockSpec((1, L_in, cin_p), lambda b, l: (b, 0, 0)),
        pl.BlockSpec((3 * cin_p, cout_p), lambda b, l: (0, 0)),
        pl.BlockSpec((1, cout_p), lambda b, l: (0, 0)),
        pl.BlockSpec((1, cin_p), lambda b, l: (0, 0)),
        pl.BlockSpec((1, cin_p), lambda b, l: (0, 0)),
    ]
    dup_bytes = 0
    if upsample:
        # Host-built compile-time constant 0/1 duplication matrix (DMA'd once).
        dup = jnp.asarray(
            (np.arange(TL)[:, None] // 2) == np.arange(half)[None, :],
            dtype=jnp.bfloat16)
        operands.append(dup)
        in_specs.append(pl.BlockSpec((TL, half), lambda b, l: (0, 0)))
        dup_bytes = TL * half * 2

    # VMEM budget (double-buffered blocks); kept well under v7x's 64 MiB physical VMEM.
    blk_bytes = (L_in * cin_p * 4 + 3 * cin_p * cout_p * 2 + TL * cout_p * 4
                 + 2 * cout_p * 4 + 2 * cin_p * 4 + cout_p * 4 + dup_bytes)
    vmem_limit = int(min(64 << 20, max(8 << 20, 4 * blk_bytes)))

    flops = 2 * B * L_out * (3 * cin_p) * cout_p
    if upsample:
        flops += 2 * B * L_out * half * cin_p
    bytes_accessed = (B * L_in * cin_p + B * L_out * cout_p + B * 2 * cout_p) * 4 \
        + 3 * cin_p * cout_p * 2 + dup_bytes

    y, stats = pl.pallas_call(
        kern,
        out_shape=(
            jax.ShapeDtypeStruct((B, L_out, cout_p), jnp.float32),
            jax.ShapeDtypeStruct((B, 2, cout_p), jnp.float32),
        ),
        grid=(B, n_lt),
        in_specs=in_specs,
        out_specs=(
            pl.BlockSpec((1, TL, cout_p), lambda b, l: (b, l, 0)),
            pl.BlockSpec((1, 2, cout_p), lambda b, l: (b, 0, 0)),
        ),
        compiler_params=pltpu.CompilerParams(
            dimension_semantics=("parallel", "arbitrary"),
            vmem_limit_bytes=vmem_limit),
        cost_estimate=pl.CostEstimate(
            flops=flops, transcendentals=0, bytes_accessed=bytes_accessed),
    )(*operands)
    return y, stats


def _bn_scale_shift(stats, gamma, beta, count):
    """Fold PyTorch train-mode BatchNorm1d (biased batch stats) into scale/shift."""
    s = jnp.sum(stats[:, 0, :], axis=0)
    q = jnp.sum(stats[:, 1, :], axis=0)
    mean = s / count
    var = jnp.maximum(q / count - mean * mean, 0.0)
    scale = gamma * jax.lax.rsqrt(var + 1e-5)
    shift = beta - mean * scale
    return scale.reshape(1, -1), shift.reshape(1, -1)


# --------------------------------------------------------------------------------
# parameters
# --------------------------------------------------------------------------------
def _make_layer(key, cin, cout):
    cin_p, cout_p = _cpad(cin), _cpad(cout)
    kw, kb = jax.random.split(key)
    bound = 1.0 / math.sqrt(cin * 3)
    w = jax.random.uniform(kw, (3, cin, cout), jnp.float32, -bound, bound)
    b = jax.random.uniform(kb, (1, cout), jnp.float32, -bound, bound)
    w_p = jnp.zeros((3, cin_p, cout_p), jnp.float32).at[:, :cin, :cout].set(w)
    return dict(
        w=w_p.reshape(3 * cin_p, cout_p),               # tap-major packed, lane-padded
        b=_pad_last(b, cout_p),
        gamma=jnp.zeros((cout_p,), jnp.float32).at[:cout].set(1.0),
        beta=jnp.zeros((cout_p,), jnp.float32),
    )


def init_vae_params(key, n_layers):
    keys = jax.random.split(key, 2 * n_layers + 4)
    ki = iter(keys)

    # Encoder: n_layers DownLayers + MidLayer (conv3 + BN + ReLU each)
    enc_chans = [(1, 16)] + [(16 * 2 ** i, 16 * 2 ** (i + 1)) for i in range(n_layers - 1)]
    enc_chans.append((16 * 2 ** (n_layers - 1), 16 * 2 ** (n_layers - 1)))   # MidLayer
    enc = [_make_layer(next(ki), ci, co) for ci, co in enc_chans]

    # Decoder: n_layers UpLayers + out conv
    latent_c = (16 * 2 ** (n_layers - 1)) // 2
    dec_chans = [(16 * 2 ** (n_layers - i), 16 * 2 ** (n_layers - i - 1))
                 for i in range(n_layers - 1)]
    dec_chans.append((16 * 2, 16))
    # TODO(synk): the original PyTorch Decoder's first UpLayer expects 16*2**n_layers
    # input channels while the VAE latent (mean) only has 16*2**(n_layers-2); the
    # reference forward cannot run as written, so the first up-layer's in_channels is
    # rewired to the latent width (all other layers match the module definition).
    dec_chans[0] = (latent_c, dec_chans[0][1])
    dec = [_make_layer(next(ki), ci, co) for ci, co in dec_chans]

    out = _make_layer(next(ki), 16, 1)
    c_mid = 16 * 2 ** (n_layers - 1)
    return {"enc": enc, "dec": dec, "out": out}, c_mid


# --------------------------------------------------------------------------------
# forward
# --------------------------------------------------------------------------------
def vae_forward(x_ncl, params, eps, *, c_mid, deterministic=False):
    """x_ncl: (N, 1, L) f32 (PyTorch NCL) -> (N, 1, L * 2**n_layers)."""
    x = jnp.transpose(x_ncl, (0, 2, 1)).astype(jnp.float32)        # -> (B, L, C)
    B = x.shape[0]
    x = _pad_last(x, params["enc"][0]["w"].shape[0] // 3)

    # Encoder (DownLayers + MidLayer).  Each kernel emits the pre-BN conv output plus
    # batch stats; the folded BN+ReLU is applied by the *next* kernel (no extra pass).
    scl = sft = None
    for layer in params["enc"]:
        y, st = conv_layer(x, layer, in_scale=scl, in_shift=sft, upsample=False)
        scl, sft = _bn_scale_shift(st, layer["gamma"], layer["beta"], B * y.shape[1])
        x = y

    # Latent: apply MidLayer's BN+ReLU, chunk along channels, reparameterize (JAX glue).
    h = jnp.maximum(x * scl + sft, 0.0)
    mean, logvar = h[..., :c_mid // 2], h[..., c_mid // 2:c_mid]
    z = mean if deterministic else mean + eps * jnp.exp(0.5 * logvar)

    # Decoder (UpLayers: fused x2 upsample + conv; BN+ReLU folded into the next layer).
    x = _pad_last(z, params["dec"][0]["w"].shape[0] // 3)
    scl = sft = None
    for layer in params["dec"]:
        y, st = conv_layer(x, layer, in_scale=scl, in_shift=sft, upsample=True)
        scl, sft = _bn_scale_shift(st, layer["gamma"], layer["beta"], B * y.shape[1])
        x = y

    # out_layer: plain Conv1d(16, 1, 3, 1, 1); applies the last UpLayer's BN+ReLU to
    # its input, no BN/ReLU on its own output.  Cout padded to 128 (lane-dense store),
    # the real channel is sliced out here.
    y, _ = conv_layer(x, params["out"], in_scale=scl, in_shift=sft, upsample=False)
    return jnp.transpose(y[..., :1], (0, 2, 1))                    # back to (N, 1, L_out)


# --------------------------------------------------------------------------------
# pure-JAX reference (same padded params) for a numerical self-check
# --------------------------------------------------------------------------------
def _ref_forward(x_ncl, params, eps, *, c_mid, deterministic=False):
    def conv(h, layer, upsample):
        if upsample:
            h = jnp.repeat(h, 2, axis=1)                # F.interpolate(scale=2, nearest)
        cin_p = layer["w"].shape[0] // 3
        w = layer["w"].reshape(3, cin_p, -1)
        hp = jnp.pad(h, ((0, 0), (1, 1), (0, 0)))
        L = h.shape[1]
        y = sum(jnp.einsum("blc,cd->bld",
                           hp[:, k:k + L, :].astype(jnp.bfloat16),
                           w[k].astype(jnp.bfloat16),
                           preferred_element_type=jnp.float32) for k in range(3))
        return y + layer["b"]

    def bn_relu(y, layer):
        m = jnp.mean(y, axis=(0, 1))
        v = jnp.mean((y - m) ** 2, axis=(0, 1))
        y = (y - m) * jax.lax.rsqrt(v + 1e-5) * layer["gamma"] + layer["beta"]
        return jnp.maximum(y, 0.0)

    h = jnp.transpose(x_ncl, (0, 2, 1)).astype(jnp.float32)
    h = _pad_last(h, params["enc"][0]["w"].shape[0] // 3)
    for layer in params["enc"]:
        h = bn_relu(conv(h, layer, False), layer)
    mean, logvar = h[..., :c_mid // 2], h[..., c_mid // 2:c_mid]
    z = mean if deterministic else mean + eps * jnp.exp(0.5 * logvar)
    h = _pad_last(z, params["dec"][0]["w"].shape[0] // 3)
    for layer in params["dec"]:
        h = bn_relu(conv(h, layer, True), layer)
    y = conv(h, params["out"], False)
    return jnp.transpose(y[..., :1], (0, 2, 1))


# --------------------------------------------------------------------------------
# main
# --------------------------------------------------------------------------------
if __name__ == "__main__":
    n_layers = 2
    B, L = 2, 16

    key = jax.random.PRNGKey(0)
    k_param, k_x, k_eps = jax.random.split(key, 3)

    params, c_mid = init_vae_params(k_param, n_layers)
    x = jax.random.normal(k_x, (B, 1, L), jnp.float32)     # (N, C=1, L), PyTorch layout
    eps = jax.random.normal(k_eps, (B, L, c_mid // 2), jnp.float32)

    fwd = jax.jit(vae_forward, static_argnames=("c_mid", "deterministic"))
    out = fwd(x, params, eps, c_mid=c_mid, deterministic=False)
    out = jax.block_until_ready(out)

    assert out.shape == (B, 1, L * 2 ** n_layers), out.shape
    assert bool(jnp.all(jnp.isfinite(out)))

    # numerical self-check against a pure-JAX reference of the same forward
    ref = _ref_forward(x, params, eps, c_mid=c_mid, deterministic=False)
    np.testing.assert_allclose(np.asarray(out), np.asarray(ref), rtol=2e-2, atol=2e-2)

    print("KERNEL_OK")
</pallas_src>

<mosaic_0001>
module attributes {stable_mosaic.version = 11 : i64} {
  func.func @_conv_bn_kernel(%arg0: i32, %arg1: i32, %arg2: memref<1x16x128xf32, #tpu.memory_space<vmem>>, %arg3: memref<384x128xbf16, #tpu.memory_space<vmem>>, %arg4: memref<1x128xf32, #tpu.memory_space<vmem>>, %arg5: memref<1x128xf32, #tpu.memory_space<vmem>>, %arg6: memref<1x128xf32, #tpu.memory_space<vmem>>, %arg7: memref<1x16x128xf32, #tpu.memory_space<vmem>>, %arg8: memref<1x2x128xf32, #tpu.memory_space<vmem>>) attributes {dimension_semantics = [#tpu.dimension_semantics<parallel>, #tpu.dimension_semantics<arbitrary>], iteration_bounds = array<i64: 2, 1>, scalar_prefetch = 0 : i64, scratch_operands = 0 : i64, tpu.core_type = #tpu.core_type<tc>, window_params = [{transform_indices = @transform_0, window_bounds = array<i64: 1, 16, 128>}, {pipeline_mode = #tpu.pipeline_mode<synchronous>, transform_indices = @transform_1, window_bounds = array<i64: 384, 128>}, {pipeline_mode = #tpu.pipeline_mode<synchronous>, transform_indices = @transform_2, window_bounds = array<i64: 1, 128>}, {pipeline_mode = #tpu.pipeline_mode<synchronous>, transform_indices = @transform_3, window_bounds = array<i64: 1, 128>}, {pipeline_mode = #tpu.pipeline_mode<synchronous>, transform_indices = @transform_4, window_bounds = array<i64: 1, 128>}, {transform_indices = @transform_5, window_bounds = array<i64: 1, 16, 128>}, {transform_indices = @transform_6, window_bounds = array<i64: 1, 2, 128>}]} {
    %c16_i32 = arith.constant 16 : i32
    %0 = arith.muli %arg1, %c16_i32 : i32
    %1 = tpu.assume_multiple %0, 8 : i32
    %c0 = arith.constant 0 : index
    %2 = arith.index_cast %1 : i32 to index
    %c0_0 = arith.constant 0 : index
    %3 = vector.load %arg2[%c0, %2, %c0_0] : memref<1x16x128xf32, #tpu.memory_space<vmem>>, vector<1x16x128xf32>
    %4 = vector.shape_cast %3 : vector<1x16x128xf32> to vector<16x128xf32>
    %c1_i32 = arith.constant 1 : i32
    %5 = arith.subi %1, %c1_i32 : i32
    %c0_i32 = arith.constant 0 : i32
    %6 = arith.maxsi %5, %c0_i32 : i32
    %c0_1 = arith.constant 0 : index
    %7 = arith.index_cast %6 : i32 to index
    %c0_2 = arith.constant 0 : index
    %8 = vector.load %arg2[%c0_1, %7, %c0_2] : memref<1x16x128xf32, #tpu.memory_space<vmem>>, vector<1x1x128xf32>
    %9 = vector.shape_cast %8 : vector<1x1x128xf32> to vector<1x128xf32>
    %c16_i32_3 = arith.constant 16 : i32
    %10 = arith.addi %1, %c16_i32_3 : i32
    %c15_i32 = arith.constant 15 : i32
    %11 = arith.minsi %10, %c15_i32 : i32
    %c0_4 = arith.constant 0 : index
    %12 = arith.index_cast %11 : i32 to index
    %c0_5 = arith.constant 0 : index
    %13 = vector.load %arg2[%c0_4, %12, %c0_5] : memref<1x16x128xf32, #tpu.memory_space<vmem>>, vector<1x1x128xf32>
    %14 = vector.shape_cast %13 : vector<1x1x128xf32> to vector<1x128xf32>
    %c0_i32_6 = arith.constant 0 : i32
    %15 = arith.cmpi sgt, %1, %c0_i32_6 : i32
    %cst = arith.constant 0.000000e+00 : f32
    %16 = vector.broadcast %cst : f32 to vector<1x128xf32>
    %17 = arith.select %15, %9, %16 : vector<1x128xf32>
    %c16_i32_7 = arith.constant 16 : i32
    %18 = arith.addi %1, %c16_i32_7 : i32
    %c16_i32_8 = arith.constant 16 : i32
    %19 = arith.cmpi slt, %18, %c16_i32_8 : i32
    %cst_9 = arith.constant 0.000000e+00 : f32
    %20 = vector.broadcast %cst_9 : f32 to vector<1x128xf32>
    %21 = arith.select %19, %14, %20 : vector<1x128xf32>
    %22 = vector.extract_strided_slice %4 {offsets = [0, 0], sizes = [15, 128], strides = [1, 1]} : vector<16x128xf32> to vector<15x128xf32>
    %23 = tpu.concatenate %17, %22 in 0 : vector<1x128xf32>, vector<15x128xf32> -> vector<16x128xf32>
    %24 = vector.extract_strided_slice %4 {offsets = [1, 0], sizes = [15, 128], strides = [1, 1]} : vector<16x128xf32> to vector<15x128xf32>
    %25 = tpu.concatenate %24, %21 in 0 : vector<15x128xf32>, vector<1x128xf32> -> vector<16x128xf32>
    %26 = tpu.concatenate %23, %4, %25 in 1 : vector<16x128xf32>, vector<16x128xf32>, vector<16x128xf32> -> vector<16x384xf32>
    %27 = arith.truncf %26 : vector<16x384xf32> to vector<16x384xbf16>
    %c0_10 = arith.constant 0 : index
    %c0_11 = arith.constant 0 : index
    %28 = vector.load %arg3[%c0_10, %c0_11] : memref<384x128xbf16, #tpu.memory_space<vmem>>, vector<384x128xbf16>
    %cst_12 = arith.constant dense<0.000000e+00> : vector<16x128xf32>
    %29 = tpu.matmul %27, %28, %cst_12 {dimension_numbers = #tpu.dot_dimension_numbers<[1], [0], [0], [1], [0, 0, 1, 1], [], []>} : vector<16x384xbf16>, vector<384x128xbf16>, vector<16x128xf32> -> vector<16x128xf32>
    %c0_13 = arith.constant 0 : index
    %c0_14 = arith.constant 0 : index
    %30 = vector.load %arg4[%c0_13, %c0_14] : memref<1x128xf32, #tpu.memory_space<vmem>>, vector<1x128xf32>
    %31 = vector.broadcast %30 : vector<1x128xf32> to vector<16x128xf32>
    %32 = arith.addf %29, %31 : vector<16x128xf32>
    %c0_15 = arith.constant 0 : index
    %c0_16 = arith.constant 0 : index
    %c0_17 = arith.constant 0 : index
    %33 = vector.load %arg7[%c0_15, %c0_16, %c0_17] : memref<1x16x128xf32, #tpu.memory_space<vmem>>, vector<1x16x128xf32>
    %34 = vector.shape_cast %33 : vector<1x16x128xf32> to vector<16x128xf32>
    %35 = vector.shape_cast %32 : vector<16x128xf32> to vector<1x16x128xf32>
    tpu.vector_store %arg7[%c0_15, %c0_16, %c0_17], %35 {strides = array<i32>} : memref<1x16x128xf32, #tpu.memory_space<vmem>>, vector<1x16x128xf32>,
    %cst_18 = arith.constant dense<0.000000e+00> : vector<128xf32>
    %36 = vector.multi_reduction <add>, %32, %cst_18 [0] : vector<16x128xf32> to vector<128xf32>
    %37 = vector.shape_cast %36 : vector<128xf32> to vector<1x128xf32>
    %38 = arith.mulf %32, %32 : vector<16x128xf32>
    %cst_19 = arith.constant dense<0.000000e+00> : vector<128xf32>
    %39 = vector.multi_reduction <add>, %38, %cst_19 [0] : vector<16x128xf32> to vector<128xf32>
    %40 = vector.shape_cast %39 : vector<128xf32> to vector<1x128xf32>
    %41 = tpu.concatenate %37, %40 in 0 : vector<1x128xf32>, vector<1x128xf32> -> vector<2x128xf32>
    %c0_i32_20 = arith.constant 0 : i32
    %42 = arith.cmpi eq, %arg1, %c0_i32_20 : i32
    %43 = arith.extui %42 : i1 to i32
    %c0_i32_21 = arith.constant 0 : i32
    %44 = arith.cmpi ne, %43, %c0_i32_21 : i32
    scf.if %44 {
      %c0_24 = arith.constant 0 : index
      %c0_25 = arith.constant 0 : index
      %c0_26 = arith.constant 0 : index
      %48 = vector.load %arg8[%c0_24, %c0_25, %c0_26] : memref<1x2x128xf32, #tpu.memory_space<vmem>>, vector<1x2x128xf32>
      %49 = vector.shape_cast %48 : vector<1x2x128xf32> to vector<2x128xf32>
      %50 = vector.shape_cast %41 : vector<2x128xf32> to vector<1x2x128xf32>
      tpu.vector_store %arg8[%c0_24, %c0_25, %c0_26], %50 {strides = array<i32>} : memref<1x2x128xf32, #tpu.memory_space<vmem>>, vector<1x2x128xf32>,
    } else {
    }
    %c0_i32_22 = arith.constant 0 : i32
    %45 = arith.cmpi sgt, %arg1, %c0_i32_22 : i32
    %46 = arith.extui %45 : i1 to i32
    %c0_i32_23 = arith.constant 0 : i32
    %47 = arith.cmpi ne, %46, %c0_i32_23 : i32
    scf.if %47 {
      %c0_24 = arith.constant 0 : index
      %c0_25 = arith.constant 0 : index
      %c0_26 = arith.constant 0 : index
      %48 = vector.load %arg8[%c0_24, %c0_25, %c0_26] : memref<1x2x128xf32, #tpu.memory_space<vmem>>, vector<1x2x128xf32>
      %49 = vector.shape_cast %48 : vector<1x2x128xf32> to vector<2x128xf32>
      %50 = arith.addf %49, %41 : vector<2x128xf32>
      %c0_27 = arith.constant 0 : index
      %c0_28 = arith.constant 0 : index
      %c0_29 = arith.constant 0 : index
      %51 = vector.load %arg8[%c0_27, %c0_28, %c0_29] : memref<1x2x128xf32, #tpu.memory_space<vmem>>, vector<1x2x128xf32>
      %52 = vector.shape_cast %51 : vector<1x2x128xf32> to vector<2x128xf32>
      %53 = vector.shape_cast %50 : vector<2x128xf32> to vector<1x2x128xf32>
      tpu.vector_store %arg8[%c0_27, %c0_28, %c0_29], %53 {strides = array<i32>} : memref<1x2x128xf32, #tpu.memory_space<vmem>>, vector<1x2x128xf32>,
    } else {
    }
    return
  }
  func.func @transform_0(%arg0: i32, %arg1: i32) -> (i32, i32, i32) {
    %c0_i32 = arith.constant 0 : i32
    %c0_i32_0 = arith.constant 0 : i32
    %c0_i32_1 = arith.constant 0 : i32
    return %arg0, %c0_i32, %c0_i32_0 : i32, i32, i32
  }
  func.func @transform_1(%arg0: i32, %arg1: i32) -> (i32, i32) {
    %c0_i32 = arith.constant 0 : i32
    %c0_i32_0 = arith.constant 0 : i32
    %c0_i32_1 = arith.constant 0 : i32
    return %c0_i32, %c0_i32_0 : i32, i32
  }
  func.func @transform_2(%arg0: i32, %arg1: i32) -> (i32, i32) {
    %c0_i32 = arith.constant 0 : i32
    %c0_i32_0 = arith.constant 0 : i32
    %c0_i32_1 = arith.constant 0 : i32
    return %c0_i32, %c0_i32_0 : i32, i32
  }
  func.func @transform_3(%arg0: i32, %arg1: i32) -> (i32, i32) {
    %c0_i32 = arith.constant 0 : i32
    %c0_i32_0 = arith.constant 0 : i32
    %c0_i32_1 = arith.constant 0 : i32
    return %c0_i32, %c0_i32_0 : i32, i32
  }
  func.func @transform_4(%arg0: i32, %arg1: i32) -> (i32, i32) {
    %c0_i32 = arith.constant 0 : i32
    %c0_i32_0 = arith.constant 0 : i32
    %c0_i32_1 = arith.constant 0 : i32
    return %c0_i32, %c0_i32_0 : i32, i32
  }
  func.func @transform_5(%arg0: i32, %arg1: i32) -> (i32, i32, i32) {
    %c0_i32 = arith.constant 0 : i32
    %c0_i32_0 = arith.constant 0 : i32
    return %arg0, %arg1, %c0_i32 : i32, i32, i32
  }
  func.func @transform_6(%arg0: i32, %arg1: i32) -> (i32, i32, i32) {
    %c0_i32 = arith.constant 0 : i32
    %c0_i32_0 = arith.constant 0 : i32
    %c0_i32_1 = arith.constant 0 : i32
    return %arg0, %c0_i32, %c0_i32_0 : i32, i32, i32
  }
}

module attributes {stable_mosaic.version = 11 : i64} {
  func.func @_conv_bn_kernel(%arg0: i32, %arg1: i32, %arg2: memref<1x16x128xf32, #tpu.memory_space<vmem>>, %arg3: memref<384x128xbf16, #tpu.memory_space<vmem>>, %arg4: memref<1x128xf32, #tpu.memory_space<vmem>>, %arg5: memref<1x128xf32, #tpu.memory_space<vmem>>, %arg6: memref<1x128xf32, #tpu.memory_space<vmem>>, %arg7: memref<1x16x128xf32, #tpu.memory_space<vmem>>, %arg8: memref<1x2x128xf32, #tpu.memory_space<vmem>>) attributes {dimension_semantics = [#tpu.dimension_semantics<parallel>, #tpu.dimension_semantics<arbitrary>], iteration_bounds = array<i64: 2, 1>, scalar_prefetch = 0 : i64, scratch_operands = 0 : i64, tpu.core_type = #tpu.core_type<tc>, window_params = [{transform_indices = @transform_0, window_bounds = array<i64: 1, 16, 128>}, {pipeline_mode = #tpu.pipeline_mode<synchronous>, transform_indices = @transform_1, window_bounds = array<i64: 384, 128>}, {pipeline_mode = #tpu.pipeline_mode<synchronous>, transform_indices = @transform_2, window_bounds = array<i64: 1, 128>}, {pipeline_mode = #tpu.pipeline_mode<synchronous>, transform_indices = @transform_3, window_bounds = array<i64: 1, 128>}, {pipeline_mode = #tpu.pipeline_mode<synchronous>, transform_indices = @transform_4, window_bounds = array<i64: 1, 128>}, {transform_indices = @transform_5, window_bounds = array<i64: 1, 16, 128>}, {transform_indices = @transform_6, window_bounds = array<i64: 1, 2, 128>}]} {
    %c16_i32 = arith.constant 16 : i32
    %0 = arith.muli %arg1, %c16_i32 : i32
    %1 = tpu.assume_multiple %0, 8 : i32
    %c0 = arith.constant 0 : index
    %2 = arith.index_cast %1 : i32 to index
    %c0_0 = arith.constant 0 : index
    %3 = vector.load %arg2[%c0, %2, %c0_0] : memref<1x16x128xf32, #tpu.memory_space<vmem>>, vector<1x16x128xf32>
    %4 = vector.shape_cast %3 : vector<1x16x128xf32> to vector<16x128xf32>
    %c0_1 = arith.constant 0 : index
    %c0_2 = arith.constant 0 : index
    %5 = vector.load %arg5[%c0_1, %c0_2] : memref<1x128xf32, #tpu.memory_space<vmem>>, vector<1x128xf32>
    %6 = vector.broadcast %5 : vector<1x128xf32> to vector<16x128xf32>
    %7 = arith.mulf %4, %6 : vector<16x128xf32>
    %c0_3 = arith.constant 0 : index
    %c0_4 = arith.constant 0 : index
    %8 = vector.load %arg6[%c0_3, %c0_4] : memref<1x128xf32, #tpu.memory_space<vmem>>, vector<1x128xf32>
    %9 = vector.broadcast %8 : vector<1x128xf32> to vector<16x128xf32>
    %10 = arith.addf %7, %9 : vector<16x128xf32>
    %cst = arith.constant 0.000000e+00 : f32
    %11 = vector.broadcast %cst : f32 to vector<16x128xf32>
    %12 = arith.maximumf %10, %11 : vector<16x128xf32>
    %c1_i32 = arith.constant 1 : i32
    %13 = arith.subi %1, %c1_i32 : i32
    %c0_i32 = arith.constant 0 : i32
    %14 = arith.maxsi %13, %c0_i32 : i32
    %c0_5 = arith.constant 0 : index
    %15 = arith.index_cast %14 : i32 to index
    %c0_6 = arith.constant 0 : index
    %16 = vector.load %arg2[%c0_5, %15, %c0_6] : memref<1x16x128xf32, #tpu.memory_space<vmem>>, vector<1x1x128xf32>
    %17 = vector.shape_cast %16 : vector<1x1x128xf32> to vector<1x128xf32>
    %c0_7 = arith.constant 0 : index
    %c0_8 = arith.constant 0 : index
    %18 = vector.load %arg5[%c0_7, %c0_8] : memref<1x128xf32, #tpu.memory_space<vmem>>, vector<1x128xf32>
    %19 = arith.mulf %17, %18 : vector<1x128xf32>
    %c0_9 = arith.constant 0 : index
    %c0_10 = arith.constant 0 : index
    %20 = vector.load %arg6[%c0_9, %c0_10] : memref<1x128xf32, #tpu.memory_space<vmem>>, vector<1x128xf32>
    %21 = arith.addf %19, %20 : vector<1x128xf32>
    %cst_11 = arith.constant 0.000000e+00 : f32
    %22 = vector.broadcast %cst_11 : f32 to vector<1x128xf32>
    %23 = arith.maximumf %21, %22 : vector<1x128xf32>
    %c16_i32_12 = arith.constant 16 : i32
    %24 = arith.addi %1, %c16_i32_12 : i32
    %c15_i32 = arith.constant 15 : i32
    %25 = arith.minsi %24, %c15_i32 : i32
    %c0_13 = arith.constant 0 : index
    %26 = arith.index_cast %25 : i32 to index
    %c0_14 = arith.constant 0 : index
    %27 = vector.load %arg2[%c0_13, %26, %c0_14] : memref<1x16x128xf32, #tpu.memory_space<vmem>>, vector<1x1x128xf32>
    %28 = vector.shape_cast %27 : vector<1x1x128xf32> to vector<1x128xf32>
    %c0_15 = arith.constant 0 : index
    %c0_16 = arith.constant 0 : index
    %29 = vector.load %arg5[%c0_15, %c0_16] : memref<1x128xf32, #tpu.memory_space<vmem>>, vector<1x128xf32>
    %30 = arith.mulf %28, %29 : vector<1x128xf32>
    %c0_17 = arith.constant 0 : index
    %c0_18 = arith.constant 0 : index
    %31 = vector.load %arg6[%c0_17, %c0_18] : memref<1x128xf32, #tpu.memory_space<vmem>>, vector<1x128xf32>
    %32 = arith.addf %30, %31 : vector<1x128xf32>
    %cst_19 = arith.constant 0.000000e+00 : f32
    %33 = vector.broadcast %cst_19 : f32 to vector<1x128xf32>
    %34 = arith.maximumf %32, %33 : vector<1x128xf32>
    %c0_i32_20 = arith.constant 0 : i32
    %35 = arith.cmpi sgt, %1, %c0_i32_20 : i32
    %cst_21 = arith.constant 0.000000e+00 : f32
    %36 = vector.broadcast %cst_21 : f32 to vector<1x128xf32>
    %37 = arith.select %35, %23, %36 : vector<1x128xf32>
    %c16_i32_22 = arith.constant 16 : i32
    %38 = arith.addi %1, %c16_i32_22 : i32
    %c16_i32_23 = arith.constant 16 : i32
    %39 = arith.cmpi slt, %38, %c16_i32_23 : i32
    %cst_24 = arith.constant 0.000000e+00 : f32
    %40 = vector.broadcast %cst_24 : f32 to vector<1x128xf32>
    %41 = arith.select %39, %34, %40 : vector<1x128xf32>
    %42 = vector.extract_strided_slice %12 {offsets = [0, 0], sizes = [15, 128], strides = [1, 1]} : vector<16x128xf32> to vector<15x128xf32>
    %43 = tpu.concatenate %37, %42 in 0 : vector<1x128xf32>, vector<15x128xf32> -> vector<16x128xf32>
    %44 = vector.extract_strided_slice %12 {offsets = [1, 0], sizes = [15, 128], strides = [1, 1]} : vector<16x128xf32> to vector<15x128xf32>
    %45 = tpu.concatenate %44, %41 in 0 : vector<15x128xf32>, vector<1x128xf32> -> vector<16x128xf32>
    %46 = tpu.concatenate %43, %12, %45 in 1 : vector<16x128xf32>, vector<16x128xf32>, vector<16x128xf32> -> vector<16x384xf32>
    %47 = arith.truncf %46 : vector<16x384xf32> to vector<16x384xbf16>
    %c0_25 = arith.constant 0 : index
    %c0_26 = arith.constant 0 : index
    %48 = vector.load %arg3[%c0_25, %c0_26] : memref<384x128xbf16, #tpu.memory_space<vmem>>, vector<384x128xbf16>
    %cst_27 = arith.constant dense<0.000000e+00> : vector<16x128xf32>
    %49 = tpu.matmul %47, %48, %cst_27 {dimension_numbers = #tpu.dot_dimension_numbers<[1], [0], [0], [1], [0, 0, 1, 1], [], []>} : vector<16x384xbf16>, vector<384x128xbf16>, vector<16x128xf32> -> vector<16x128xf32>
    %c0_28 = arith.constant 0 : index
    %c0_29 = arith.constant 0 : index
    %50 = vector.load %arg4[%c0_28, %c0_29] : memref<1x128xf32, #tpu.memory_space<vmem>>, vector<1x128xf32>
    %51 = vector.broadcast %50 : vector<1x128xf32> to vector<16x128xf32>
    %52 = arith.addf %49, %51 : vector<16x128xf32>
    %c0_30 = arith.constant 0 : index
    %c0_31 = arith.constant 0 : index
    %c0_32 = arith.constant 0 : index
    %53 = vector.load %arg7[%c0_30, %c0_31, %c0_32] : memref<1x16x128xf32, #tpu.memory_space<vmem>>, vector<1x16x128xf32>
    %54 = vector.shape_cast %53 : vector<1x16x128xf32> to vector<16x128xf32>
    %55 = vector.shape_cast %52 : vector<16x128xf32> to vector<1x16x128xf32>
    tpu.vector_store %arg7[%c0_30, %c0_31, %c0_32], %55 {strides = array<i32>} : memref<1x16x128xf32, #tpu.memory_space<vmem>>, vector<1x16x128xf32>,
    %cst_33 = arith.constant dense<0.000000e+00> : vector<128xf32>
    %56 = vector.multi_reduction <add>, %52, %cst_33 [0] : vector<16x128xf32> to vector<128xf32>
    %57 = vector.shape_cast %56 : vector<128xf32> to vector<1x128xf32>
    %58 = arith.mulf %52, %52 : vector<16x128xf32>
    %cst_34 = arith.constant dense<0.000000e+00> : vector<128xf32>
    %59 = vector.multi_reduction <add>, %58, %cst_34 [0] : vector<16x128xf32> to vector<128xf32>
    %60 = vector.shape_cast %59 : vector<128xf32> to vector<1x128xf32>
    %61 = tpu.concatenate %57, %60 in 0 : vector<1x128xf32>, vector<1x128xf32> -> vector<2x128xf32>
    %c0_i32_35 = arith.constant 0 : i32
    %62 = arith.cmpi eq, %arg1, %c0_i32_35 : i32
    %63 = arith.extui %62 : i1 to i32
    %c0_i32_36 = arith.constant 0 : i32
    %64 = arith.cmpi ne, %63, %c0_i32_36 : i32
    scf.if %64 {
      %c0_39 = arith.constant 0 : index
      %c0_40 = arith.constant 0 : index
      %c0_41 = arith.constant 0 : index
      %68 = vector.load %arg8[%c0_39, %c0_40, %c0_41] : memref<1x2x128xf32, #tpu.memory_space<vmem>>, vector<1x2x128xf32>
      %69 = vector.shape_cast %68 : vector<1x2x128xf32> to vector<2x128xf32>
      %70 = vector.shape_cast %61 : vector<2x128xf32> to vector<1x2x128xf32>
      tpu.vector_store %arg8[%c0_39, %c0_40, %c0_41], %70 {strides = array<i32>} : memref<1x2x128xf32, #tpu.memory_space<vmem>>, vector<1x2x128xf32>,
    } else {
    }
    %c0_i32_37 = arith.constant 0 : i32
    %65 = arith.cmpi sgt, %arg1, %c0_i32_37 : i32
    %66 = arith.extui %65 : i1 to i32
    %c0_i32_38 = arith.constant 0 : i32
    %67 = arith.cmpi ne, %66, %c0_i32_38 : i32
    scf.if %67 {
      %c0_39 = arith.constant 0 : index
      %c0_40 = arith.constant 0 : index
      %c0_41 = arith.constant 0 : index
      %68 = vector.load %arg8[%c0_39, %c0_40, %c0_41] : memref<1x2x128xf32, #tpu.memory_space<vmem>>, vector<1x2x128xf32>
      %69 = vector.shape_cast %68 : vector<1x2x128xf32> to vector<2x128xf32>
      %70 = arith.addf %69, %61 : vector<2x128xf32>
      %c0_42 = arith.constant 0 : index
      %c0_43 = arith.constant 0 : index
      %c0_44 = arith.constant 0 : index
      %71 = vector.load %arg8[%c0_42, %c0_43, %c0_44] : memref<1x2x128xf32, #tpu.memory_space<vmem>>, vector<1x2x128xf32>
      %72 = vector.shape_cast %71 : vector<1x2x128xf32> to vector<2x128xf32>
      %73 = vector.shape_cast %70 : vector<2x128xf32> to vector<1x2x128xf32>
      tpu.vector_store %arg8[%c0_42, %c0_43, %c0_44], %73 {strides = array<i32>} : memref<1x2x128xf32, #tpu.memory_space<vmem>>, vector<1x2x128xf32>,
    } else {
    }
    return
  }
  func.func @transform_0(%arg0: i32, %arg1: i32) -> (i32, i32, i32) {
    %c0_i32 = arith.constant 0 : i32
    %c0_i32_0 = arith.constant 0 : i32
    %c0_i32_1 = arith.constant 0 : i32
    return %arg0, %c0_i32, %c0_i32_0 : i32, i32, i32
  }
  func.func @transform_1(%arg0: i32, %arg1: i32) -> (i32, i32) {
    %c0_i32 = arith.constant 0 : i32
    %c0_i32_0 = arith.constant 0 : i32
    %c0_i32_1 = arith.constant 0 : i32
    return %c0_i32, %c0_i32_0 : i32, i32
  }
  func.func @transform_2(%arg0: i32, %arg1: i32) -> (i32, i32) {
    %c0_i32 = arith.constant 0 : i32
    %c0_i32_0 = arith.constant 0 : i32
    %c0_i32_1 = arith.constant 0 : i32
    return %c0_i32, %c0_i32_0 : i32, i32
  }
  func.func @transform_3(%arg0: i32, %arg1: i32) -> (i32, i32) {
    %c0_i32 = arith.constant 0 : i32
    %c0_i32_0 = arith.constant 0 : i32
    %c0_i32_1 = arith.constant 0 : i32
    return %c0_i32, %c0_i32_0 : i32, i32
  }
  func.func @transform_4(%arg0: i32, %arg1: i32) -> (i32, i32) {
    %c0_i32 = arith.constant 0 : i32
    %c0_i32_0 = arith.constant 0 : i32
    %c0_i32_1 = arith.constant 0 : i32
    return %c0_i32, %c0_i32_0 : i32, i32
  }
  func.func @transform_5(%arg0: i32, %arg1: i32) -> (i32, i32, i32) {
    %c0_i32 = arith.constant 0 : i32
    %c0_i32_0 = arith.constant 0 : i32
    return %arg0, %arg1, %c0_i32 : i32, i32, i32
  }
  func.func @transform_6(%arg0: i32, %arg1: i32) -> (i32, i32, i32) {
    %c0_i32 = arith.constant 0 : i32
    %c0_i32_0 = arith.constant 0 : i32
    %c0_i32_1 = arith.constant 0 : i32
    return %arg0, %c0_i32, %c0_i32_0 : i32, i32, i32
  }
}

module attributes {stable_mosaic.version = 11 : i64} {
  func.func @_conv_bn_kernel(%arg0: i32, %arg1: i32, %arg2: memref<1x16x128xf32, #tpu.memory_space<vmem>>, %arg3: memref<384x128xbf16, #tpu.memory_space<vmem>>, %arg4: memref<1x128xf32, #tpu.memory_space<vmem>>, %arg5: memref<1x128xf32, #tpu.memory_space<vmem>>, %arg6: memref<1x128xf32, #tpu.memory_space<vmem>>, %arg7: memref<32x16xbf16, #tpu.memory_space<vmem>>, %arg8: memref<1x32x128xf32, #tpu.memory_space<vmem>>, %arg9: memref<1x2x128xf32, #tpu.memory_space<vmem>>) attributes {dimension_semantics = [#tpu.dimension_semantics<parallel>, #tpu.dimension_semantics<arbitrary>], iteration_bounds = array<i64: 2, 1>, scalar_prefetch = 0 : i64, scratch_operands = 0 : i64, tpu.core_type = #tpu.core_type<tc>, window_params = [{transform_indices = @transform_0, window_bounds = array<i64: 1, 16, 128>}, {pipeline_mode = #tpu.pipeline_mode<synchronous>, transform_indices = @transform_1, window_bounds = array<i64: 384, 128>}, {pipeline_mode = #tpu.pipeline_mode<synchronous>, transform_indices = @transform_2, window_bounds = array<i64: 1, 128>}, {pipeline_mode = #tpu.pipeline_mode<synchronous>, transform_indices = @transform_3, window_bounds = array<i64: 1, 128>}, {pipeline_mode = #tpu.pipeline_mode<synchronous>, transform_indices = @transform_4, window_bounds = array<i64: 1, 128>}, {pipeline_mode = #tpu.pipeline_mode<synchronous>, transform_indices = @transform_5, window_bounds = array<i64: 32, 16>}, {transform_indices = @transform_6, window_bounds = array<i64: 1, 32, 128>}, {transform_indices = @transform_7, window_bounds = array<i64: 1, 2, 128>}]} {
    %c16_i32 = arith.constant 16 : i32
    %0 = arith.muli %arg1, %c16_i32 : i32
    %1 = tpu.assume_multiple %0, 8 : i32
    %c0 = arith.constant 0 : index
    %2 = arith.index_cast %1 : i32 to index
    %c0_0 = arith.constant 0 : index
    %3 = vector.load %arg2[%c0, %2, %c0_0] : memref<1x16x128xf32, #tpu.memory_space<vmem>>, vector<1x16x128xf32>
    %4 = vector.shape_cast %3 : vector<1x16x128xf32> to vector<16x128xf32>
    %c1_i32 = arith.constant 1 : i32
    %5 = arith.subi %1, %c1_i32 : i32
    %c0_i32 = arith.constant 0 : i32
    %6 = arith.maxsi %5, %c0_i32 : i32
    %c0_1 = arith.constant 0 : index
    %7 = arith.index_cast %6 : i32 to index
    %c0_2 = arith.constant 0 : index
    %8 = vector.load %arg2[%c0_1, %7, %c0_2] : memref<1x16x128xf32, #tpu.memory_space<vmem>>, vector<1x1x128xf32>
    %9 = vector.shape_cast %8 : vector<1x1x128xf32> to vector<1x128xf32>
    %c16_i32_3 = arith.constant 16 : i32
    %10 = arith.addi %1, %c16_i32_3 : i32
    %c15_i32 = arith.constant 15 : i32
    %11 = arith.minsi %10, %c15_i32 : i32
    %c0_4 = arith.constant 0 : index
    %12 = arith.index_cast %11 : i32 to index
    %c0_5 = arith.constant 0 : index
    %13 = vector.load %arg2[%c0_4, %12, %c0_5] : memref<1x16x128xf32, #tpu.memory_space<vmem>>, vector<1x1x128xf32>
    %14 = vector.shape_cast %13 : vector<1x1x128xf32> to vector<1x128xf32>
    %c0_i32_6 = arith.constant 0 : i32
    %15 = arith.cmpi sgt, %1, %c0_i32_6 : i32
    %cst = arith.constant 0.000000e+00 : f32
    %16 = vector.broadcast %cst : f32 to vector<1x128xf32>
    %17 = arith.select %15, %9, %16 : vector<1x128xf32>
    %c16_i32_7 = arith.constant 16 : i32
    %18 = arith.addi %1, %c16_i32_7 : i32
    %c16_i32_8 = arith.constant 16 : i32
    %19 = arith.cmpi slt, %18, %c16_i32_8 : i32
    %cst_9 = arith.constant 0.000000e+00 : f32
    %20 = vector.broadcast %cst_9 : f32 to vector<1x128xf32>
    %21 = arith.select %19, %14, %20 : vector<1x128xf32>
    %c0_10 = arith.constant 0 : index
    %c0_11 = arith.constant 0 : index
    %22 = vector.load %arg7[%c0_10, %c0_11] : memref<32x16xbf16, #tpu.memory_space<vmem>>, vector<32x16xbf16>
    %23 = arith.truncf %4 : vector<16x128xf32> to vector<16x128xbf16>
    %cst_12 = arith.constant dense<0.000000e+00> : vector<32x128xf32>
    %24 = tpu.matmul %22, %23, %cst_12 {dimension_numbers = #tpu.dot_dimension_numbers<[1], [0], [0], [1], [0, 0, 1, 1], [], []>} : vector<32x16xbf16>, vector<16x128xbf16>, vector<32x128xf32> -> vector<32x128xf32>
    %25 = vector.extract_strided_slice %24 {offsets = [0, 0], sizes = [31, 128], strides = [1, 1]} : vector<32x128xf32> to vector<31x128xf32>
    %26 = tpu.concatenate %17, %25 in 0 : vector<1x128xf32>, vector<31x128xf32> -> vector<32x128xf32>
    %27 = vector.extract_strided_slice %24 {offsets = [1, 0], sizes = [31, 128], strides = [1, 1]} : vector<32x128xf32> to vector<31x128xf32>
    %28 = tpu.concatenate %27, %21 in 0 : vector<31x128xf32>, vector<1x128xf32> -> vector<32x128xf32>
    %29 = tpu.concatenate %26, %24, %28 in 1 : vector<32x128xf32>, vector<32x128xf32>, vector<32x128xf32> -> vector<32x384xf32>
    %30 = arith.truncf %29 : vector<32x384xf32> to vector<32x384xbf16>
    %c0_13 = arith.constant 0 : index
    %c0_14 = arith.constant 0 : index
    %31 = vector.load %arg3[%c0_13, %c0_14] : memref<384x128xbf16, #tpu.memory_space<vmem>>, vector<384x128xbf16>
    %cst_15 = arith.constant dense<0.000000e+00> : vector<32x128xf32>
    %32 = tpu.matmul %30, %31, %cst_15 {dimension_numbers = #tpu.dot_dimension_numbers<[1], [0], [0], [1], [0, 0, 1, 1], [], []>} : vector<32x384xbf16>, vector<384x128xbf16>, vector<32x128xf32> -> vector<32x128xf32>
    %c0_16 = arith.constant 0 : index
    %c0_17 = arith.constant 0 : index
    %33 = vector.load %arg4[%c0_16, %c0_17] : memref<1x128xf32, #tpu.memory_space<vmem>>, vector<1x128xf32>
    %34 = vector.broadcast %33 : vector<1x128xf32> to vector<32x128xf32>
    %35 = arith.addf %32, %34 : vector<32x128xf32>
    %c0_18 = arith.constant 0 : index
    %c0_19 = arith.constant 0 : index
    %c0_20 = arith.constant 0 : index
    %36 = vector.load %arg8[%c0_18, %c0_19, %c0_20] : memref<1x32x128xf32, #tpu.memory_space<vmem>>, vector<1x32x128xf32>
    %37 = vector.shape_cast %36 : vector<1x32x128xf32> to vector<32x128xf32>
    %38 = vector.shape_cast %35 : vector<32x128xf32> to vector<1x32x128xf32>
    tpu.vector_store %arg8[%c0_18, %c0_19, %c0_20], %38 {strides = array<i32>} : memref<1x32x128xf32, #tpu.memory_space<vmem>>, vector<1x32x128xf32>,
    %cst_21 = arith.constant dense<0.000000e+00> : vector<128xf32>
    %39 = vector.multi_reduction <add>, %35, %cst_21 [0] : vector<32x128xf32> to vector<128xf32>
    %40 = vector.shape_cast %39 : vector<128xf32> to vector<1x128xf32>
    %41 = arith.mulf %35, %35 : vector<32x128xf32>
    %cst_22 = arith.constant dense<0.000000e+00> : vector<128xf32>
    %42 = vector.multi_reduction <add>, %41, %cst_22 [0] : vector<32x128xf32> to vector<128xf32>
    %43 = vector.shape_cast %42 : vector<128xf32> to vector<1x128xf32>
    %44 = tpu.concatenate %40, %43 in 0 : vector<1x128xf32>, vector<1x128xf32> -> vector<2x128xf32>
    %c0_i32_23 = arith.constant 0 : i32
    %45 = arith.cmpi eq, %arg1, %c0_i32_23 : i32
    %46 = arith.extui %45 : i1 to i32
    %c0_i32_24 = arith.constant 0 : i32
    %47 = arith.cmpi ne, %46, %c0_i32_24 : i32
    scf.if %47 {
      %c0_27 = arith.constant 0 : index
      %c0_28 = arith.constant 0 : index
      %c0_29 = arith.constant 0 : index
      %51 = vector.load %arg9[%c0_27, %c0_28, %c0_29] : memref<1x2x128xf32, #tpu.memory_space<vmem>>, vector<1x2x128xf32>
      %52 = vector.shape_cast %51 : vector<1x2x128xf32> to vector<2x128xf32>
      %53 = vector.shape_cast %44 : vector<2x128xf32> to vector<1x2x128xf32>
      tpu.vector_store %arg9[%c0_27, %c0_28, %c0_29], %53 {strides = array<i32>} : memref<1x2x128xf32, #tpu.memory_space<vmem>>, vector<1x2x128xf32>,
    } else {
    }
    %c0_i32_25 = arith.constant 0 : i32
    %48 = arith.cmpi sgt, %arg1, %c0_i32_25 : i32
    %49 = arith.extui %48 : i1 to i32
    %c0_i32_26 = arith.constant 0 : i32
    %50 = arith.cmpi ne, %49, %c0_i32_26 : i32
    scf.if %50 {
      %c0_27 = arith.constant 0 : index
      %c0_28 = arith.constant 0 : index
      %c0_29 = arith.constant 0 : index
      %51 = vector.load %arg9[%c0_27, %c0_28, %c0_29] : memref<1x2x128xf32, #tpu.memory_space<vmem>>, vector<1x2x128xf32>
      %52 = vector.shape_cast %51 : vector<1x2x128xf32> to vector<2x128xf32>
      %53 = arith.addf %52, %44 : vector<2x128xf32>
      %c0_30 = arith.constant 0 : index
      %c0_31 = arith.constant 0 : index
      %c0_32 = arith.constant 0 : index
      %54 = vector.load %arg9[%c0_30, %c0_31, %c0_32] : memref<1x2x128xf32, #tpu.memory_space<vmem>>, vector<1x2x128xf32>
      %55 = vector.shape_cast %54 : vector<1x2x128xf32> to vector<2x128xf32>
      %56 = vector.shape_cast %53 : vector<2x128xf32> to vector<1x2x128xf32>
      tpu.vector_store %arg9[%c0_30, %c0_31, %c0_32], %56 {strides = array<i32>} : memref<1x2x128xf32, #tpu.memory_space<vmem>>, vector<1x2x128xf32>,
    } else {
    }
    return
  }
  func.func @transform_0(%arg0: i32, %arg1: i32) -> (i32, i32, i32) {
    %c0_i32 = arith.constant 0 : i32
    %c0_i32_0 = arith.constant 0 : i32
    %c0_i32_1 = arith.constant 0 : i32
    return %arg0, %c0_i32, %c0_i32_0 : i32, i32, i32
  }
  func.func @transform_1(%arg0: i32, %arg1: i32) -> (i32, i32) {
    %c0_i32 = arith.constant 0 : i32
    %c0_i32_0 = arith.constant 0 : i32
    %c0_i32_1 = arith.constant 0 : i32
    return %c0_i32, %c0_i32_0 : i32, i32
  }
  func.func @transform_2(%arg0: i32, %arg1: i32) -> (i32, i32) {
    %c0_i32 = arith.constant 0 : i32
    %c0_i32_0 = arith.constant 0 : i32
    %c0_i32_1 = arith.constant 0 : i32
    return %c0_i32, %c0_i32_0 : i32, i32
  }
  func.func @transform_3(%arg0: i32, %arg1: i32) -> (i32, i32) {
    %c0_i32 = arith.constant 0 : i32
    %c0_i32_0 = arith.constant 0 : i32
    %c0_i32_1 = arith.constant 0 : i32
    return %c0_i32, %c0_i32_0 : i32, i32
  }
  func.func @transform_4(%arg0: i32, %arg1: i32) -> (i32, i32) {
    %c0_i32 = arith.constant 0 : i32
    %c0_i32_0 = arith.constant 0 : i32
    %c0_i32_1 = arith.constant 0 : i32
    return %c0_i32, %c0_i32_0 : i32, i32
  }
  func.func @transform_5(%arg0: i32, %arg1: i32) -> (i32, i32) {
    %c0_i32 = arith.constant 0 : i32
    %c0_i32_0 = arith.constant 0 : i32
    %c0_i32_1 = arith.constant 0 : i32
    return %c0_i32, %c0_i32_0 : i32, i32
  }
  func.func @transform_6(%arg0: i32, %arg1: i32) -> (i32, i32, i32) {
    %c0_i32 = arith.constant 0 : i32
    %c0_i32_0 = arith.constant 0 : i32
    return %arg0, %arg1, %c0_i32 : i32, i32, i32
  }
  func.func @transform_7(%arg0: i32, %arg1: i32) -> (i32, i32, i32) {
    %c0_i32 = arith.constant 0 : i32
    %c0_i32_0 = arith.constant 0 : i32
    %c0_i32_1 = arith.constant 0 : i32
    return %arg0, %c0_i32, %c0_i32_0 : i32, i32, i32
  }
}

module attributes {stable_mosaic.version = 11 : i64} {
  func.func @_conv_bn_kernel(%arg0: i32, %arg1: i32, %arg2: memref<1x32x128xf32, #tpu.memory_space<vmem>>, %arg3: memref<384x128xbf16, #tpu.memory_space<vmem>>, %arg4: memref<1x128xf32, #tpu.memory_space<vmem>>, %arg5: memref<1x128xf32, #tpu.memory_space<vmem>>, %arg6: memref<1x128xf32, #tpu.memory_space<vmem>>, %arg7: memref<64x32xbf16, #tpu.memory_space<vmem>>, %arg8: memref<1x64x128xf32, #tpu.memory_space<vmem>>, %arg9: memref<1x2x128xf32, #tpu.memory_space<vmem>>) attributes {dimension_semantics = [#tpu.dimension_semantics<parallel>, #tpu.dimension_semantics<arbitrary>], iteration_bounds = array<i64: 2, 1>, scalar_prefetch = 0 : i64, scratch_operands = 0 : i64, tpu.core_type = #tpu.core_type<tc>, window_params = [{transform_indices = @transform_0, window_bounds = array<i64: 1, 32, 128>}, {pipeline_mode = #tpu.pipeline_mode<synchronous>, transform_indices = @transform_1, window_bounds = array<i64: 384, 128>}, {pipeline_mode = #tpu.pipeline_mode<synchronous>, transform_indices = @transform_2, window_bounds = array<i64: 1, 128>}, {pipeline_mode = #tpu.pipeline_mode<synchronous>, transform_indices = @transform_3, window_bounds = array<i64: 1, 128>}, {pipeline_mode = #tpu.pipeline_mode<synchronous>, transform_indices = @transform_4, window_bounds = array<i64: 1, 128>}, {pipeline_mode = #tpu.pipeline_mode<synchronous>, transform_indices = @transform_5, window_bounds = array<i64: 64, 32>}, {transform_indices = @transform_6, window_bounds = array<i64: 1, 64, 128>}, {transform_indices = @transform_7, window_bounds = array<i64: 1, 2, 128>}]} {
    %c32_i32 = arith.constant 32 : i32
    %0 = arith.muli %arg1, %c32_i32 : i32
    %1 = tpu.assume_multiple %0, 8 : i32
    %c0 = arith.constant 0 : index
    %2 = arith.index_cast %1 : i32 to index
    %c0_0 = arith.constant 0 : index
    %3 = vector.load %arg2[%c0, %2, %c0_0] : memref<1x32x128xf32, #tpu.memory_space<vmem>>, vector<1x32x128xf32>
    %4 = vector.shape_cast %3 : vector<1x32x128xf32> to vector<32x128xf32>
    %c0_1 = arith.constant 0 : index
    %c0_2 = arith.constant 0 : index
    %5 = vector.load %arg5[%c0_1, %c0_2] : memref<1x128xf32, #tpu.memory_space<vmem>>, vector<1x128xf32>
    %6 = vector.broadcast %5 : vector<1x128xf32> to vector<32x128xf32>
    %7 = arith.mulf %4, %6 : vector<32x128xf32>
    %c0_3 = arith.constant 0 : index
    %c0_4 = arith.constant 0 : index
    %8 = vector.load %arg6[%c0_3, %c0_4] : memref<1x128xf32, #tpu.memory_space<vmem>>, vector<1x128xf32>
    %9 = vector.broadcast %8 : vector<1x128xf32> to vector<32x128xf32>
    %10 = arith.addf %7, %9 : vector<32x128xf32>
    %cst = arith.constant 0.000000e+00 : f32
    %11 = vector.broadcast %cst : f32 to vector<32x128xf32>
    %12 = arith.maximumf %10, %11 : vector<32x128xf32>
    %c1_i32 = arith.constant 1 : i32
    %13 = arith.subi %1, %c1_i32 : i32
    %c0_i32 = arith.constant 0 : i32
    %14 = arith.maxsi %13, %c0_i32 : i32
    %c0_5 = arith.constant 0 : index
    %15 = arith.index_cast %14 : i32 to index
    %c0_6 = arith.constant 0 : index
    %16 = vector.load %arg2[%c0_5, %15, %c0_6] : memref<1x32x128xf32, #tpu.memory_space<vmem>>, vector<1x1x128xf32>
    %17 = vector.shape_cast %16 : vector<1x1x128xf32> to vector<1x128xf32>
    %c0_7 = arith.constant 0 : index
    %c0_8 = arith.constant 0 : index
    %18 = vector.load %arg5[%c0_7, %c0_8] : memref<1x128xf32, #tpu.memory_space<vmem>>, vector<1x128xf32>
    %19 = arith.mulf %17, %18 : vector<1x128xf32>
    %c0_9 = arith.constant 0 : index
    %c0_10 = arith.constant 0 : index
    %20 = vector.load %arg6[%c0_9, %c0_10] : memref<1x128xf32, #tpu.memory_space<vmem>>, vector<1x128xf32>
    %21 = arith.addf %19, %20 : vector<1x128xf32>
    %cst_11 = arith.constant 0.000000e+00 : f32
    %22 = vector.broadcast %cst_11 : f32 to vector<1x128xf32>
    %23 = arith.maximumf %21, %22 : vector<1x128xf32>
    %c32_i32_12 = arith.constant 32 : i32
    %24 = arith.addi %1, %c32_i32_12 : i32
    %c31_i32 = arith.constant 31 : i32
    %25 = arith.minsi %24, %c31_i32 : i32
    %c0_13 = arith.constant 0 : index
    %26 = arith.index_cast %25 : i32 to index
    %c0_14 = arith.constant 0 : index
    %27 = vector.load %arg2[%c0_13, %26, %c0_14] : memref<1x32x128xf32, #tpu.memory_space<vmem>>, vector<1x1x128xf32>
    %28 = vector.shape_cast %27 : vector<1x1x128xf32> to vector<1x128xf32>
    %c0_15 = arith.constant 0 : index
    %c0_16 = arith.constant 0 : index
    %29 = vector.load %arg5[%c0_15, %c0_16] : memref<1x128xf32, #tpu.memory_space<vmem>>, vector<1x128xf32>
    %30 = arith.mulf %28, %29 : vector<1x128xf32>
    %c0_17 = arith.constant 0 : index
    %c0_18 = arith.constant 0 : index
    %31 = vector.load %arg6[%c0_17, %c0_18] : memref<1x128xf32, #tpu.memory_space<vmem>>, vector<1x128xf32>
    %32 = arith.addf %30, %31 : vector<1x128xf32>
    %cst_19 = arith.constant 0.000000e+00 : f32
    %33 = vector.broadcast %cst_19 : f32 to vector<1x128xf32>
    %34 = arith.maximumf %32, %33 : vector<1x128xf32>
    %c0_i32_20 = arith.constant 0 : i32
    %35 = arith.cmpi sgt, %1, %c0_i32_20 : i32
    %cst_21 = arith.constant 0.000000e+00 : f32
    %36 = vector.broadcast %cst_21 : f32 to vector<1x128xf32>
    %37 = arith.select %35, %23, %36 : vector<1x128xf32>
    %c32_i32_22 = arith.constant 32 : i32
    %38 = arith.addi %1, %c32_i32_22 : i32
    %c32_i32_23 = arith.constant 32 : i32
    %39 = arith.cmpi slt, %38, %c32_i32_23 : i32
    %cst_24 = arith.constant 0.000000e+00 : f32
    %40 = vector.broadcast %cst_24 : f32 to vector<1x128xf32>
    %41 = arith.select %39, %34, %40 : vector<1x128xf32>
    %c0_25 = arith.constant 0 : index
    %c0_26 = arith.constant 0 : index
    %42 = vector.load %arg7[%c0_25, %c0_26] : memref<64x32xbf16, #tpu.memory_space<vmem>>, vector<64x32xbf16>
    %43 = arith.truncf %12 : vector<32x128xf32> to vector<32x128xbf16>
    %cst_27 = arith.constant dense<0.000000e+00> : vector<64x128xf32>
    %44 = tpu.matmul %42, %43, %cst_27 {dimension_numbers = #tpu.dot_dimension_numbers<[1], [0], [0], [1], [0, 0, 1, 1], [], []>} : vector<64x32xbf16>, vector<32x128xbf16>, vector<64x128xf32> -> vector<64x128xf32>
    %45 = vector.extract_strided_slice %44 {offsets = [0, 0], sizes = [63, 128], strides = [1, 1]} : vector<64x128xf32> to vector<63x128xf32>
    %46 = tpu.concatenate %37, %45 in 0 : vector<1x128xf32>, vector<63x128xf32> -> vector<64x128xf32>
    %47 = vector.extract_strided_slice %44 {offsets = [1, 0], sizes = [63, 128], strides = [1, 1]} : vector<64x128xf32> to vector<63x128xf32>
    %48 = tpu.concatenate %47, %41 in 0 : vector<63x128xf32>, vector<1x128xf32> -> vector<64x128xf32>
    %49 = tpu.concatenate %46, %44, %48 in 1 : vector<64x128xf32>, vector<64x128xf32>, vector<64x128xf32> -> vector<64x384xf32>
    %50 = arith.truncf %49 : vector<64x384xf32> to vector<64x384xbf16>
    %c0_28 = arith.constant 0 : index
    %c0_29 = arith.constant 0 : index
    %51 = vector.load %arg3[%c0_28, %c0_29] : memref<384x128xbf16, #tpu.memory_space<vmem>>, vector<384x128xbf16>
    %cst_30 = arith.constant dense<0.000000e+00> : vector<64x128xf32>
    %52 = tpu.matmul %50, %51, %cst_30 {dimension_numbers = #tpu.dot_dimension_numbers<[1], [0], [0], [1], [0, 0, 1, 1], [], []>} : vector<64x384xbf16>, vector<384x128xbf16>, vector<64x128xf32> -> vector<64x128xf32>
    %c0_31 = arith.constant 0 : index
    %c0_32 = arith.constant 0 : index
    %53 = vector.load %arg4[%c0_31, %c0_32] : memref<1x128xf32, #tpu.memory_space<vmem>>, vector<1x128xf32>
    %54 = vector.broadcast %53 : vector<1x128xf32> to vector<64x128xf32>
    %55 = arith.addf %52, %54 : vector<64x128xf32>
    %c0_33 = arith.constant 0 : index
    %c0_34 = arith.constant 0 : index
    %c0_35 = arith.constant 0 : index
    %56 = vector.load %arg8[%c0_33, %c0_34, %c0_35] : memref<1x64x128xf32, #tpu.memory_space<vmem>>, vector<1x64x128xf32>
    %57 = vector.shape_cast %56 : vector<1x64x128xf32> to vector<64x128xf32>
    %58 = vector.shape_cast %55 : vector<64x128xf32> to vector<1x64x128xf32>
    tpu.vector_store %arg8[%c0_33, %c0_34, %c0_35], %58 {strides = array<i32>} : memref<1x64x128xf32, #tpu.memory_space<vmem>>, vector<1x64x128xf32>,
    %cst_36 = arith.constant dense<0.000000e+00> : vector<128xf32>
    %59 = vector.multi_reduction <add>, %55, %cst_36 [0] : vector<64x128xf32> to vector<128xf32>
    %60 = vector.shape_cast %59 : vector<128xf32> to vector<1x128xf32>
    %61 = arith.mulf %55, %55 : vector<64x128xf32>
    %cst_37 = arith.constant dense<0.000000e+00> : vector<128xf32>
    %62 = vector.multi_reduction <add>, %61, %cst_37 [0] : vector<64x128xf32> to vector<128xf32>
    %63 = vector.shape_cast %62 : vector<128xf32> to vector<1x128xf32>
    %64 = tpu.concatenate %60, %63 in 0 : vector<1x128xf32>, vector<1x128xf32> -> vector<2x128xf32>
    %c0_i32_38 = arith.constant 0 : i32
    %65 = arith.cmpi eq, %arg1, %c0_i32_38 : i32
    %66 = arith.extui %65 : i1 to i32
    %c0_i32_39 = arith.constant 0 : i32
    %67 = arith.cmpi ne, %66, %c0_i32_39 : i32
    scf.if %67 {
      %c0_42 = arith.constant 0 : index
      %c0_43 = arith.constant 0 : index
      %c0_44 = arith.constant 0 : index
      %71 = vector.load %arg9[%c0_42, %c0_43, %c0_44] : memref<1x2x128xf32, #tpu.memory_space<vmem>>, vector<1x2x128xf32>
      %72 = vector.shape_cast %71 : vector<1x2x128xf32> to vector<2x128xf32>
      %73 = vector.shape_cast %64 : vector<2x128xf32> to vector<1x2x128xf32>
      tpu.vector_store %arg9[%c0_42, %c0_43, %c0_44], %73 {strides = array<i32>} : memref<1x2x128xf32, #tpu.memory_space<vmem>>, vector<1x2x128xf32>,
    } else {
    }
    %c0_i32_40 = arith.constant 0 : i32
    %68 = arith.cmpi sgt, %arg1, %c0_i32_40 : i32
    %69 = arith.extui %68 : i1 to i32
    %c0_i32_41 = arith.constant 0 : i32
    %70 = arith.cmpi ne, %69, %c0_i32_41 : i32
    scf.if %70 {
      %c0_42 = arith.constant 0 : index
      %c0_43 = arith.constant 0 : index
      %c0_44 = arith.constant 0 : index
      %71 = vector.load %arg9[%c0_42, %c0_43, %c0_44] : memref<1x2x128xf32, #tpu.memory_space<vmem>>, vector<1x2x128xf32>
      %72 = vector.shape_cast %71 : vector<1x2x128xf32> to vector<2x128xf32>
      %73 = arith.addf %72, %64 : vector<2x128xf32>
      %c0_45 = arith.constant 0 : index
      %c0_46 = arith.constant 0 : index
      %c0_47 = arith.constant 0 : index
      %74 = vector.load %arg9[%c0_45, %c0_46, %c0_47] : memref<1x2x128xf32, #tpu.memory_space<vmem>>, vector<1x2x128xf32>
      %75 = vector.shape_cast %74 : vector<1x2x128xf32> to vector<2x128xf32>
      %76 = vector.shape_cast %73 : vector<2x128xf32> to vector<1x2x128xf32>
      tpu.vector_store %arg9[%c0_45, %c0_46, %c0_47], %76 {strides = array<i32>} : memref<1x2x128xf32, #tpu.memory_space<vmem>>, vector<1x2x128xf32>,
    } else {
    }
    return
  }
  func.func @transform_0(%arg0: i32, %arg1: i32) -> (i32, i32, i32) {
    %c0_i32 = arith.constant 0 : i32
    %c0_i32_0 = arith.constant 0 : i32
    %c0_i32_1 = arith.constant 0 : i32
    return %arg0, %c0_i32, %c0_i32_0 : i32, i32, i32
  }
  func.func @transform_1(%arg0: i32, %arg1: i32) -> (i32, i32) {
    %c0_i32 = arith.constant 0 : i32
    %c0_i32_0 = arith.constant 0 : i32
    %c0_i32_1 = arith.constant 0 : i32
    return %c0_i32, %c0_i32_0 : i32, i32
  }
  func.func @transform_2(%arg0: i32, %arg1: i32) -> (i32, i32) {
    %c0_i32 = arith.constant 0 : i32
    %c0_i32_0 = arith.constant 0 : i32
    %c0_i32_1 = arith.constant 0 : i32
    return %c0_i32, %c0_i32_0 : i32, i32
  }
  func.func @transform_3(%arg0: i32, %arg1: i32) -> (i32, i32) {
    %c0_i32 = arith.constant 0 : i32
    %c0_i32_0 = arith.constant 0 : i32
    %c0_i32_1 = arith.constant 0 : i32
    return %c0_i32, %c0_i32_0 : i32, i32
  }
  func.func @transform_4(%arg0: i32, %arg1: i32) -> (i32, i32) {
    %c0_i32 = arith.constant 0 : i32
    %c0_i32_0 = arith.constant 0 : i32
    %c0_i32_1 = arith.constant 0 : i32
    return %c0_i32, %c0_i32_0 : i32, i32
  }
  func.func @transform_5(%arg0: i32, %arg1: i32) -> (i32, i32) {
    %c0_i32 = arith.constant 0 : i32
    %c0_i32_0 = arith.constant 0 : i32
    %c0_i32_1 = arith.constant 0 : i32
    return %c0_i32, %c0_i32_0 : i32, i32
  }
  func.func @transform_6(%arg0: i32, %arg1: i32) -> (i32, i32, i32) {
    %c0_i32 = arith.constant 0 : i32
    %c0_i32_0 = arith.constant 0 : i32
    return %arg0, %arg1, %c0_i32 : i32, i32, i32
  }
  func.func @transform_7(%arg0: i32, %arg1: i32) -> (i32, i32, i32) {
    %c0_i32 = arith.constant 0 : i32
    %c0_i32_0 = arith.constant 0 : i32
    %c0_i32_1 = arith.constant 0 : i32
    return %arg0, %c0_i32, %c0_i32_0 : i32, i32, i32
  }
}

module attributes {stable_mosaic.version = 11 : i64} {
  func.func @_conv_bn_kernel(%arg0: i32, %arg1: i32, %arg2: memref<1x64x128xf32, #tpu.memory_space<vmem>>, %arg3: memref<384x128xbf16, #tpu.memory_space<vmem>>, %arg4: memref<1x128xf32, #tpu.memory_space<vmem>>, %arg5: memref<1x128xf32, #tpu.memory_space<vmem>>, %arg6: memref<1x128xf32, #tpu.memory_space<vmem>>, %arg7: memref<1x64x128xf32, #tpu.memory_space<vmem>>, %arg8: memref<1x2x128xf32, #tpu.memory_space<vmem>>) attributes {dimension_semantics = [#tpu.dimension_semantics<parallel>, #tpu.dimension_semantics<arbitrary>], iteration_bounds = array<i64: 2, 1>, scalar_prefetch = 0 : i64, scratch_operands = 0 : i64, tpu.core_type = #tpu.core_type<tc>, window_params = [{transform_indices = @transform_0, window_bounds = array<i64: 1, 64, 128>}, {pipeline_mode = #tpu.pipeline_mode<synchronous>, transform_indices = @transform_1, window_bounds = array<i64: 384, 128>}, {pipeline_mode = #tpu.pipeline_mode<synchronous>, transform_indices = @transform_2, window_bounds = array<i64: 1, 128>}, {pipeline_mode = #tpu.pipeline_mode<synchronous>, transform_indices = @transform_3, window_bounds = array<i64: 1, 128>}, {pipeline_mode = #tpu.pipeline_mode<synchronous>, transform_indices = @transform_4, window_bounds = array<i64: 1, 128>}, {transform_indices = @transform_5, window_bounds = array<i64: 1, 64, 128>}, {transform_indices = @transform_6, window_bounds = array<i64: 1, 2, 128>}]} {
    %c64_i32 = arith.constant 64 : i32
    %0 = arith.muli %arg1, %c64_i32 : i32
    %1 = tpu.assume_multiple %0, 8 : i32
    %c0 = arith.constant 0 : index
    %2 = arith.index_cast %1 : i32 to index
    %c0_0 = arith.constant 0 : index
    %3 = vector.load %arg2[%c0, %2, %c0_0] : memref<1x64x128xf32, #tpu.memory_space<vmem>>, vector<1x64x128xf32>
    %4 = vector.shape_cast %3 : vector<1x64x128xf32> to vector<64x128xf32>
    %c0_1 = arith.constant 0 : index
    %c0_2 = arith.constant 0 : index
    %5 = vector.load %arg5[%c0_1, %c0_2] : memref<1x128xf32, #tpu.memory_space<vmem>>, vector<1x128xf32>
    %6 = vector.broadcast %5 : vector<1x128xf32> to vector<64x128xf32>
    %7 = arith.mulf %4, %6 : vector<64x128xf32>
    %c0_3 = arith.constant 0 : index
    %c0_4 = arith.constant 0 : index
    %8 = vector.load %arg6[%c0_3, %c0_4] : memref<1x128xf32, #tpu.memory_space<vmem>>, vector<1x128xf32>
    %9 = vector.broadcast %8 : vector<1x128xf32> to vector<64x128xf32>
    %10 = arith.addf %7, %9 : vector<64x128xf32>
    %cst = arith.constant 0.000000e+00 : f32
    %11 = vector.broadcast %cst : f32 to vector<64x128xf32>
    %12 = arith.maximumf %10, %11 : vector<64x128xf32>
    %c1_i32 = arith.constant 1 : i32
    %13 = arith.subi %1, %c1_i32 : i32
    %c0_i32 = arith.constant 0 : i32
    %14 = arith.maxsi %13, %c0_i32 : i32
    %c0_5 = arith.constant 0 : index
    %15 = arith.index_cast %14 : i32 to index
    %c0_6 = arith.constant 0 : index
    %16 = vector.load %arg2[%c0_5, %15, %c0_6] : memref<1x64x128xf32, #tpu.memory_space<vmem>>, vector<1x1x128xf32>
    %17 = vector.shape_cast %16 : vector<1x1x128xf32> to vector<1x128xf32>
    %c0_7 = arith.constant 0 : index
    %c0_8 = arith.constant 0 : index
    %18 = vector.load %arg5[%c0_7, %c0_8] : memref<1x128xf32, #tpu.memory_space<vmem>>, vector<1x128xf32>
    %19 = arith.mulf %17, %18 : vector<1x128xf32>
    %c0_9 = arith.constant 0 : index
    %c0_10 = arith.constant 0 : index
    %20 = vector.load %arg6[%c0_9, %c0_10] : memref<1x128xf32, #tpu.memory_space<vmem>>, vector<1x128xf32>
    %21 = arith.addf %19, %20 : vector<1x128xf32>
    %cst_11 = arith.constant 0.000000e+00 : f32
    %22 = vector.broadcast %cst_11 : f32 to vector<1x128xf32>
    %23 = arith.maximumf %21, %22 : vector<1x128xf32>
    %c64_i32_12 = arith.constant 64 : i32
    %24 = arith.addi %1, %c64_i32_12 : i32
    %c63_i32 = arith.constant 63 : i32
    %25 = arith.minsi %24, %c63_i32 : i32
    %c0_13 = arith.constant 0 : index
    %26 = arith.index_cast %25 : i32 to index
    %c0_14 = arith.constant 0 : index
    %27 = vector.load %arg2[%c0_13, %26, %c0_14] : memref<1x64x128xf32, #tpu.memory_space<vmem>>, vector<1x1x128xf32>
    %28 = vector.shape_cast %27 : vector<1x1x128xf32> to vector<1x128xf32>
    %c0_15 = arith.constant 0 : index
    %c0_16 = arith.constant 0 : index
    %29 = vector.load %arg5[%c0_15, %c0_16] : memref<1x128xf32, #tpu.memory_space<vmem>>, vector<1x128xf32>
    %30 = arith.mulf %28, %29 : vector<1x128xf32>
    %c0_17 = arith.constant 0 : index
    %c0_18 = arith.constant 0 : index
    %31 = vector.load %arg6[%c0_17, %c0_18] : memref<1x128xf32, #tpu.memory_space<vmem>>, vector<1x128xf32>
    %32 = arith.addf %30, %31 : vector<1x128xf32>
    %cst_19 = arith.constant 0.000000e+00 : f32
    %33 = vector.broadcast %cst_19 : f32 to vector<1x128xf32>
    %34 = arith.maximumf %32, %33 : vector<1x128xf32>
    %c0_i32_20 = arith.constant 0 : i32
    %35 = arith.cmpi sgt, %1, %c0_i32_20 : i32
    %cst_21 = arith.constant 0.000000e+00 : f32
    %36 = vector.broadcast %cst_21 : f32 to vector<1x128xf32>
    %37 = arith.select %35, %23, %36 : vector<1x128xf32>
    %c64_i32_22 = arith.constant 64 : i32
    %38 = arith.addi %1, %c64_i32_22 : i32
    %c64_i32_23 = arith.constant 64 : i32
    %39 = arith.cmpi slt, %38, %c64_i32_23 : i32
    %cst_24 = arith.constant 0.000000e+00 : f32
    %40 = vector.broadcast %cst_24 : f32 to vector<1x128xf32>
    %41 = arith.select %39, %34, %40 : vector<1x128xf32>
    %42 = vector.extract_strided_slice %12 {offsets = [0, 0], sizes = [63, 128], strides = [1, 1]} : vector<64x128xf32> to vector<63x128xf32>
    %43 = tpu.concatenate %37, %42 in 0 : vector<1x128xf32>, vector<63x128xf32> -> vector<64x128xf32>
    %44 = vector.extract_strided_slice %12 {offsets = [1, 0], sizes = [63, 128], strides = [1, 1]} : vector<64x128xf32> to vector<63x128xf32>
    %45 = tpu.concatenate %44, %41 in 0 : vector<63x128xf32>, vector<1x128xf32> -> vector<64x128xf32>
    %46 = tpu.concatenate %43, %12, %45 in 1 : vector<64x128xf32>, vector<64x128xf32>, vector<64x128xf32> -> vector<64x384xf32>
    %47 = arith.truncf %46 : vector<64x384xf32> to vector<64x384xbf16>
    %c0_25 = arith.constant 0 : index
    %c0_26 = arith.constant 0 : index
    %48 = vector.load %arg3[%c0_25, %c0_26] : memref<384x128xbf16, #tpu.memory_space<vmem>>, vector<384x128xbf16>
    %cst_27 = arith.constant dense<0.000000e+00> : vector<64x128xf32>
    %49 = tpu.matmul %47, %48, %cst_27 {dimension_numbers = #tpu.dot_dimension_numbers<[1], [0], [0], [1], [0, 0, 1, 1], [], []>} : vector<64x384xbf16>, vector<384x128xbf16>, vector<64x128xf32> -> vector<64x128xf32>
    %c0_28 = arith.constant 0 : index
    %c0_29 = arith.constant 0 : index
    %50 = vector.load %arg4[%c0_28, %c0_29] : memref<1x128xf32, #tpu.memory_space<vmem>>, vector<1x128xf32>
    %51 = vector.broadcast %50 : vector<1x128xf32> to vector<64x128xf32>
    %52 = arith.addf %49, %51 : vector<64x128xf32>
    %c0_30 = arith.constant 0 : index
    %c0_31 = arith.constant 0 : index
    %c0_32 = arith.constant 0 : index
    %53 = vector.load %arg7[%c0_30, %c0_31, %c0_32] : memref<1x64x128xf32, #tpu.memory_space<vmem>>, vector<1x64x128xf32>
    %54 = vector.shape_cast %53 : vector<1x64x128xf32> to vector<64x128xf32>
    %55 = vector.shape_cast %52 : vector<64x128xf32> to vector<1x64x128xf32>
    tpu.vector_store %arg7[%c0_30, %c0_31, %c0_32], %55 {strides = array<i32>} : memref<1x64x128xf32, #tpu.memory_space<vmem>>, vector<1x64x128xf32>,
    %cst_33 = arith.constant dense<0.000000e+00> : vector<128xf32>
    %56 = vector.multi_reduction <add>, %52, %cst_33 [0] : vector<64x128xf32> to vector<128xf32>
    %57 = vector.shape_cast %56 : vector<128xf32> to vector<1x128xf32>
    %58 = arith.mulf %52, %52 : vector<64x128xf32>
    %cst_34 = arith.constant dense<0.000000e+00> : vector<128xf32>
    %59 = vector.multi_reduction <add>, %58, %cst_34 [0] : vector<64x128xf32> to vector<128xf32>
    %60 = vector.shape_cast %59 : vector<128xf32> to vector<1x128xf32>
    %61 = tpu.concatenate %57, %60 in 0 : vector<1x128xf32>, vector<1x128xf32> -> vector<2x128xf32>
    %c0_i32_35 = arith.constant 0 : i32
    %62 = arith.cmpi eq, %arg1, %c0_i32_35 : i32
    %63 = arith.extui %62 : i1 to i32
    %c0_i32_36 = arith.constant 0 : i32
    %64 = arith.cmpi ne, %63, %c0_i32_36 : i32
    scf.if %64 {
      %c0_39 = arith.constant 0 : index
      %c0_40 = arith.constant 0 : index
      %c0_41 = arith.constant 0 : index
      %68 = vector.load %arg8[%c0_39, %c0_40, %c0_41] : memref<1x2x128xf32, #tpu.memory_space<vmem>>, vector<1x2x128xf32>
      %69 = vector.shape_cast %68 : vector<1x2x128xf32> to vector<2x128xf32>
      %70 = vector.shape_cast %61 : vector<2x128xf32> to vector<1x2x128xf32>
      tpu.vector_store %arg8[%c0_39, %c0_40, %c0_41], %70 {strides = array<i32>} : memref<1x2x128xf32, #tpu.memory_space<vmem>>, vector<1x2x128xf32>,
    } else {
    }
    %c0_i32_37 = arith.constant 0 : i32
    %65 = arith.cmpi sgt, %arg1, %c0_i32_37 : i32
    %66 = arith.extui %65 : i1 to i32
    %c0_i32_38 = arith.constant 0 : i32
    %67 = arith.cmpi ne, %66, %c0_i32_38 : i32
    scf.if %67 {
      %c0_39 = arith.constant 0 : index
      %c0_40 = arith.constant 0 : index
      %c0_41 = arith.constant 0 : index
      %68 = vector.load %arg8[%c0_39, %c0_40, %c0_41] : memref<1x2x128xf32, #tpu.memory_space<vmem>>, vector<1x2x128xf32>
      %69 = vector.shape_cast %68 : vector<1x2x128xf32> to vector<2x128xf32>
      %70 = arith.addf %69, %61 : vector<2x128xf32>
      %c0_42 = arith.constant 0 : index
      %c0_43 = arith.constant 0 : index
      %c0_44 = arith.constant 0 : index
      %71 = vector.load %arg8[%c0_42, %c0_43, %c0_44] : memref<1x2x128xf32, #tpu.memory_space<vmem>>, vector<1x2x128xf32>
      %72 = vector.shape_cast %71 : vector<1x2x128xf32> to vector<2x128xf32>
      %73 = vector.shape_cast %70 : vector<2x128xf32> to vector<1x2x128xf32>
      tpu.vector_store %arg8[%c0_42, %c0_43, %c0_44], %73 {strides = array<i32>} : memref<1x2x128xf32, #tpu.memory_space<vmem>>, vector<1x2x128xf32>,
    } else {
    }
    return
  }
  func.func @transform_0(%arg0: i32, %arg1: i32) -> (i32, i32, i32) {
    %c0_i32 = arith.constant 0 : i32
    %c0_i32_0 = arith.constant 0 : i32
    %c0_i32_1 = arith.constant 0 : i32
    return %arg0, %c0_i32, %c0_i32_0 : i32, i32, i32
  }
  func.func @transform_1(%arg0: i32, %arg1: i32) -> (i32, i32) {
    %c0_i32 = arith.constant 0 : i32
    %c0_i32_0 = arith.constant 0 : i32
    %c0_i32_1 = arith.constant 0 : i32
    return %c0_i32, %c0_i32_0 : i32, i32
  }
  func.func @transform_2(%arg0: i32, %arg1: i32) -> (i32, i32) {
    %c0_i32 = arith.constant 0 : i32
    %c0_i32_0 = arith.constant 0 : i32
    %c0_i32_1 = arith.constant 0 : i32
    return %c0_i32, %c0_i32_0 : i32, i32
  }
  func.func @transform_3(%arg0: i32, %arg1: i32) -> (i32, i32) {
    %c0_i32 = arith.constant 0 : i32
    %c0_i32_0 = arith.constant 0 : i32
    %c0_i32_1 = arith.constant 0 : i32
    return %c0_i32, %c0_i32_0 : i32, i32
  }
  func.func @transform_4(%arg0: i32, %arg1: i32) -> (i32, i32) {
    %c0_i32 = arith.constant 0 : i32
    %c0_i32_0 = arith.constant 0 : i32
    %c0_i32_1 = arith.constant 0 : i32
    return %c0_i32, %c0_i32_0 : i32, i32
  }
  func.func @transform_5(%arg0: i32, %arg1: i32) -> (i32, i32, i32) {
    %c0_i32 = arith.constant 0 : i32
    %c0_i32_0 = arith.constant 0 : i32
    return %arg0, %arg1, %c0_i32 : i32, i32, i32
  }
  func.func @transform_6(%arg0: i32, %arg1: i32) -> (i32, i32, i32) {
    %c0_i32 = arith.constant 0 : i32
    %c0_i32_0 = arith.constant 0 : i32
    %c0_i32_1 = arith.constant 0 : i32
    return %arg0, %c0_i32, %c0_i32_0 : i32, i32, i32
  }
}

</mosaic_0001>

<bundles_post_ra>
// kernel: vae_forward.6
= control target key start
LH: loop header
LB: loop body
LE: loop exit
PB: predicated region body
PF: predicated region fallthrough
CT: control target
= control target key end

     0   :  { %s969_s21 = smov 0   ;;  %s971_s22 = smov 0   ;;  %s1105_s0 = inlined_call_operand.vmem [shape: f32[2,16,128], index: 0, kind: input, shape index: {}]   ;;  %s1106_s1 = inlined_call_operand.vmem [shape: bf16[384,128], index: 1, kind: input, shape index: {}]   ;;  %s1107_s2 = inlined_call_operand.vmem [shape: f32[1,128], index: 2, kind: input, shape index: {}]   ;;  %s1108_s3 = inlined_call_operand.vmem [shape: f32[1,128], index: 3, kind: input, shape index: {}]   ;;  %s1109_s4 = inlined_call_operand.vmem [shape: f32[1,128], index: 4, kind: input, shape index: {}]   ;;  %s1110_s5 = inlined_call_operand.vmem [shape: f32[2,16,128], index: 5, kind: output, shape index: {0}]   ;;  %s1111_s6 = inlined_call_operand.vmem [shape: f32[2,2,128], index: 6, kind: output, shape index: {1}]  }
   0x1   :  { %s973_s23 = smov 0  }
   0x2 LB: > { %s29_s3 = sadd.s32 1, %s925_s22  ;;  %p765_p0 = scmp.ge.s32.totalorder %s929_s23, 1  ;;  %s929_s23 = sphi %s973_s23, %s17_s23   ;;  %s925_s22 = sphi %s971_s22, %s1113_s22   ;;  %s921_s21 = sphi %s969_s21, %s1112_s21  }
   0x3   : > { %p31_p1 = scmp.ge.s32.totalorder %s29_s3, 2  ;;  %p229_p2 = scmp.lt.s32.totalorder %s929_s23, 3 }
   0x5   : > { %s1115_s3 = smov (%p31_p1, %s29_s3), 0  ;;  %p230_p3 = pnand %p765_p0, %p229_p2 }
   0x6   : > { %v883_v0 = vld [vmem:[%s1106_s1 + $0x40] sm:$0xff] (!%p230_p3)   ;;  %v931_v2 = vmov (!%p230_p3), 0.0   ;;  %v886_v4 = vld [vmem:[%s1106_s1 + $0x48] sm:$0xff] (!%p230_p3)   ;;  %v889_v7 = vld [vmem:[%s1106_s1 + $0x50] sm:$0xff] (!%p230_p3)   ;;  %vm932_vm0 = vmmov (!%p230_p3), 0   ;;  %p267_p4 = scmp.lt.s32.totalorder (!%p230_p3), %s921_s21, 1 }
   0x7   : > { %233 = sbr.rel (%p230_p3) target bundleno = 278 (0x116), region = 40  ;;  %v884_v1 = vld [vmem:[%s1106_s1] sm:$0xff] (!%p230_p3)   ;;  %836 = vmatprep.subr.bf16.mxu1 (!%p230_p3), %v931_v2  ;;  %805 = vmatprep.subr.bf16.mxu0 (!%p230_p3), %v883_v0  ;;  %v887_v5 = vld [vmem:[%s1106_s1 + $0x8] sm:$0xff] (!%p230_p3)   ;;  %v890_v8 = vld [vmem:[%s1106_s1 + $0x10] sm:$0xff] (!%p230_p3)   ;;  %vm313_vm1 = vcmask (!%p230_p3), 1040384   ;;  %v327_v25 = vrot.slane (!%p230_p3), %v931_v2, 1 }
   0x8   : > { %v885_v3 = vld [vmem:[%s1106_s1 + $0x80] sm:$0xff] (!%p230_p3)   ;;  %806 = vmatpush3.bf16.msra.mxu0 (!%p230_p3), %v884_v1  ;;  %v888_v6 = vld [vmem:[%s1106_s1 + $0x88] sm:$0xff] (!%p230_p3)   ;;  %852 = vmatprep.mubr.msk.bf16.mxu1 (!%p230_p3), %vm932_vm0, %v931_v2  ;;  %v891_v9 = vld [vmem:[%s1106_s1 + $0x90] sm:$0xff] (!%p230_p3)   ;;  %vm320_vm2 = vcmask (!%p230_p3), 1046528   ;;  %vm933_vm4 = vmmov (!%p230_p3), 1  }
   0x9   : > { %837 = vmatpush3.bf16.msra.mxu1 (!%p230_p3), %v885_v3  ;;  %807 = vmatprep.subr.bf16.mxu0 (!%p230_p3), %v886_v4  ;;  %v892_v10 = vld [vmem:[%s1106_s1 + $0x58] sm:$0xff] (!%p230_p3)   ;;  %v895_v13 = vld [vmem:[%s1106_s1 + $0x60] sm:$0xff] (!%p230_p3)   ;;  %v898_v16 = vld [vmem:[%s1106_s1 + $0x68] sm:$0xff] (!%p230_p3)  }
   0xa   : > { %838 = vmatprep.subr.bf16.mxu1 (!%p230_p3), %v931_v2  ;;  %v893_v11 = vld [vmem:[%s1106_s1 + $0x18] sm:$0xff] (!%p230_p3)   ;;  %v896_v14 = vld [vmem:[%s1106_s1 + $0x20] sm:$0xff] (!%p230_p3)   ;;  %v899_v17 = vld [vmem:[%s1106_s1 + $0x28] sm:$0xff] (!%p230_p3)  }
   0xb   : > { %v894_v12 = vld [vmem:[%s1106_s1 + $0x98] sm:$0xff] (!%p230_p3)   ;;  %v897_v15 = vld [vmem:[%s1106_s1 + $0xa0] sm:$0xff] (!%p230_p3)   ;;  %v900_v18 = vld [vmem:[%s1106_s1 + $0xa8] sm:$0xff] (!%p230_p3)  }
   0xc   : > { %808 = vmatpush3.bf16.msra.mxu0 (!%p230_p3), %v887_v5  ;;  %v901_v19 = vld [vmem:[%s1106_s1 + $0x70] sm:$0xff] (!%p230_p3)   ;;  %v904_v22 = vld [vmem:[%s1106_s1 + $0x78] sm:$0xff] (!%p230_p3)   ;;  %vm797_vm3 = vmneg (!%p230_p3), %vm313_vm1 }
   0xd   : > { %839 = vmatpush3.bf16.msra.mxu1 (!%p230_p3), %v888_v6  ;;  %809 = vmatprep.subr.bf16.mxu0 (!%p230_p3), %v889_v7  ;;  %v902_v20 = vld [vmem:[%s1106_s1 + $0x30] sm:$0xff] (!%p230_p3)   ;;  %v905_v31 = vld [vmem:[%s1106_s1 + $0x38] sm:$0xff] (!%p230_p3)   ;;  %vm798_vm5 = vmpackc.low (!%p230_p3), %vm933_vm4, %vm797_vm3 }
   0xe   : > { %840 = vmatprep.subr.bf16.mxu1 %v931_v2  ;;  %s1117_s21 = smov (!%p267_p4, %s921_s21), 1  ;;  %v903_v21 = vld [vmem:[%s1106_s1 + $0xb0] sm:$0xff]   ;;  %v906_v33 = vld [vmem:[%s1106_s1 + $0xb8] sm:$0xff]   ;;  %v772_v40 = vld [vmem:[%s1107_s2] ss:$0 sm:$0xff] }
   0xf   : > { %s803_s9 = sshll.u32 %s1117_s21, 4 }
  0x10   : > { %810 = vmatpush3.bf16.msra.mxu0 %v890_v8  ;;  %s271_s18 = scalar_lea.vmem %s1105_s0, %s803_s9  ;;  %s280_s12 = scalar_lea.vmem %s1110_s5, %s803_s9 }
  0x11   : > { %841 = vmatpush3.bf16.msra.mxu1 %v891_v9  ;;  %811 = vmatprep.subr.bf16.mxu0 %v892_v10  ;;  %v289_v23 = vld [vmem:[%s271_s18] sm:$0xff]  ;;  %v290_v24 = vld [vmem:[%s271_s18 + $0x8] sm:$0xff]  ;;  %s770_s9 = sshll.u32 %s1117_s21, 1 }
  0x12   : > { %842 = vmatprep.subr.bf16.mxu1 %v931_v2  ;;  %v314_v26 = vrot.slane %v289_v23, 7  ;;  %v315_v27 = vrot.slane %v290_v24, 7  ;;  %v321_v28 = vrot.slane %v289_v23, 1  ;;  %v322_v29 = vrot.slane %v290_v24, 1  ;;  %s285_s15 = scalar_lea.vmem %s1111_s6, %s770_s9 }
  0x13   : > { %v331_v30 = vpack.c.bf16 %v290_v24, %v289_v23 }
  0x14   : > { %812 = vmatpush3.bf16.msra.mxu0 %v893_v11  ;;  %v316_v32 = vsel %vm313_vm1, %v314_v26, %v315_v27  ;;  %v323_v34 = vsel %vm320_vm2, %v321_v28, %v322_v29  ;;  %v329_v35 = vsel %vm320_vm2, %v322_v29, %v327_v25 }
  0x15   : > { %843 = vmatpush3.bf16.msra.mxu1 %v894_v12  ;;  %813 = vmatprep.subr.bf16.mxu0 %v895_v13  ;;  %v799_v36 = vpack.c.bf16 %v316_v32, %v314_v26  ;;  %v332_v37 = vpack.c.bf16 %v329_v35, %v323_v34 }
  0x16   : > { %844 = vmatprep.subr.bf16.mxu1 %v931_v2  ;;  %564 = vmatprep.mubr.bf16.mxu0 %v331_v30 }
  0x18   : > { %814 = vmatpush3.bf16.msra.mxu0 %v896_v14 }
  0x19   : > { %845 = vmatpush3.bf16.msra.mxu1 %v897_v15  ;;  %815 = vmatprep.subr.bf16.mxu0 %v898_v16 }
  0x1a   : > { %846 = vmatprep.subr.bf16.mxu1 %v931_v2 }
  0x1c   : > { %816 = vmatpush3.bf16.msra.mxu0 %v899_v17 }
  0x1d   : > { %847 = vmatpush3.bf16.msra.mxu1 %v900_v18  ;;  %817 = vmatprep.subr.bf16.mxu0 %v901_v19 }
  0x1e   : > { %848 = vmatprep.subr.bf16.mxu1 %v931_v2 }
  0x20   : > { %818 = vmatpush3.bf16.msra.mxu0 %v902_v20 }
  0x21   : > { %849 = vmatpush3.bf16.msra.mxu1 %v903_v21  ;;  %819 = vmatprep.subr.bf16.mxu0 %v904_v22 }
  0x22   : > { %850 = vmatprep.subr.bf16.mxu1 %v931_v2 }
  0x24   : > { %820 = vmatpush3.bf16.msra.mxu0 %v905_v31 }
  0x25   : > { %851 = vmatpush3.bf16.msra.mxu1 %v906_v33 }
  0x27   : > { %800 = vmatmul.mubr.msk.bf16.vlgmr.msra.gmra.mrb[0].mxu0 %vm798_vm5, %v799_v36 }
  0x28   : > { %853 = vmatmul.mubr.bf16.vlgmr.msra.gmra.mrb[0].mxu1 %v332_v37 }
  0xfa   : > { %v821_v38 = vpop.f32.mrb[0].mxu0 }
  0xfb   : > { %v822_v39 = vpop.f32.mrb[1].mxu0  ;;  %v607_v41 = vpop.f32.mrb[0].mxu1 }
  0xfc   : > { %v823_v42 = vadd.f32 %v822_v39, %v821_v38  ;;  %v824_v43 = vpop.f32.mrb[2].mxu0  ;;  %v854_v44 = vpop.f32.mrb[1].mxu1 }
  0xfd   : > { %v825_v45 = vpop.f32.mrb[3].mxu0  ;;  %v610_v46 = vpop.f32.mrb[2].mxu1 }
  0xfe   : > { %v567_v47 = vadd.f32 %v823_v42, %v772_v40  ;;  %v826_v48 = vadd.f32 %v825_v45, %v824_v43  ;;  %v855_v49 = vpop.f32.mrb[3].mxu1 }
 0x100   : > { %v608_v50 = vadd.f32 %v607_v41, %v567_v47  ;;  %v570_v51 = vadd.f32 %v826_v48, %v772_v40 }
 0x102   : > { %614 = vst [vmem:[%s280_s12] sm:$0xff] %v608_v50  ;;  %v611_v52 = vadd.f32 %v610_v46, %v570_v51  ;;  %v623_v53 = vmul.f32 %v608_v50, %v608_v50 }
 0x104   : > { %615 = vst [vmem:[%s280_s12 + $0x8] sm:$0xff] %v611_v52  ;;  %v616_v54 = vadd.f32 %v611_v52, %v608_v50  ;;  %v624_v55 = vmul.f32 %v611_v52, %v611_v52 }
 0x106   : > { %v617_v56 = vrot.slane %v616_v54, 4  ;;  %v625_v57 = vadd.f32 %v624_v55, %v623_v53 }
 0x108   : > { %v618_v58 = vadd.f32 %v617_v56, %v616_v54  ;;  %v626_v59 = vrot.slane %v625_v57, 4 }
 0x10a   : > { %v619_v60 = vrot.slane %v618_v58, 2  ;;  %v627_v61 = vadd.f32 %v626_v59, %v625_v57 }
 0x10c   : > { %v620_v62 = vadd.f32 %v619_v60, %v618_v58  ;;  %v628_v63 = vrot.slane %v627_v61, 2 }
 0x10e   : > { %v621_v0 = vrot.slane %v620_v62, 1  ;;  %v629_v1 = vadd.f32 %v628_v63, %v627_v61 }
 0x110   : > { %v630_v2 = vrot.slane %v629_v1, 1  ;;  %v622_v3 = vadd.f32 %v621_v0, %v620_v62 }
 0x112   : > { %v631_v4 = vadd.f32 %v630_v2, %v629_v1 }
 0x114   : > { %v632_v5 = vsel %vm313_vm1, %v622_v3, %v631_v4 }
 0x115   : > { %637 = vst [vmem:[%s285_s15] sm:$0x3] %v632_v5 }
 0x116 PF: > { %s17_s23 = sadd.s32 1, %s929_s23   ;;  %s1112_s21 = smov %s925_s22 }
 0x117   : > { %p14_p5 = scmp.ge.s32.totalorder %s17_s23, 4   ;;  %s1113_s22 = smov %s1115_s3 }
 0x119   :  { %16 = sbr.rel (!%p14_p5) target bundleno = 2 (0x2), region = 93 }

// kernel: vae_forward.7
= control target key start
LH: loop header
LB: loop body
LE: loop exit
PB: predicated region body
PF: predicated region fallthrough
CT: control target
= control target key end

     0   :  { %s997_s21 = smov 0   ;;  %s999_s22 = smov 0   ;;  %s1139_s0 = inlined_call_operand.vmem [shape: f32[2,16,128], index: 0, kind: input, shape index: {}]   ;;  %s1140_s1 = inlined_call_operand.vmem [shape: bf16[384,128], index: 1, kind: input, shape index: {}]   ;;  %s1141_s2 = inlined_call_operand.vmem [shape: f32[1,128], index: 2, kind: input, shape index: {}]   ;;  %s1142_s3 = inlined_call_operand.vmem [shape: f32[1,128], index: 3, kind: input, shape index: {}]   ;;  %s1143_s4 = inlined_call_operand.vmem [shape: f32[1,128], index: 4, kind: input, shape index: {}]   ;;  %s1144_s5 = inlined_call_operand.vmem [shape: f32[2,16,128], index: 5, kind: output, shape index: {0}]   ;;  %s1145_s6 = inlined_call_operand.vmem [shape: f32[2,2,128], index: 6, kind: output, shape index: {1}]  }
   0x1   :  { %s1001_s23 = smov 0  }
   0x2 LB: > { %s29_s24 = sadd.s32 1, %s953_s22  ;;  %p791_p0 = scmp.ge.s32.totalorder %s957_s23, 1  ;;  %s957_s23 = sphi %s1001_s23, %s17_s23   ;;  %s953_s22 = sphi %s999_s22, %s1147_s22   ;;  %s949_s21 = sphi %s997_s21, %s1146_s21  }
   0x3   : > { %p31_p1 = scmp.ge.s32.totalorder %s29_s24, 2  ;;  %p229_p2 = scmp.lt.s32.totalorder %s957_s23, 3 }
   0x5   : > { %s1149_s24 = smov (%p31_p1, %s29_s24), 0  ;;  %p230_p3 = pnand %p791_p0, %p229_p2 }
   0x6   : > { %v911_v0 = vld [vmem:[%s1140_s1 + $0x40] sm:$0xff] (!%p230_p3)   ;;  %v959_v2 = vmov (!%p230_p3), 0.0   ;;  %v914_v4 = vld [vmem:[%s1140_s1 + $0x48] sm:$0xff] (!%p230_p3)   ;;  %v917_v7 = vld [vmem:[%s1140_s1 + $0x50] sm:$0xff] (!%p230_p3)   ;;  %p267_p4 = scmp.lt.s32.totalorder (!%p230_p3), %s949_s21, 1  ;;  %vm960_vm0 = vmmov (!%p230_p3), 0  }
   0x7   : > { %233 = sbr.rel (%p230_p3) target bundleno = 278 (0x116), region = 40  ;;  %v912_v1 = vld [vmem:[%s1140_s1] sm:$0xff] (!%p230_p3)   ;;  %864 = vmatprep.subr.bf16.mxu1 (!%p230_p3), %v959_v2  ;;  %833 = vmatprep.subr.bf16.mxu0 (!%p230_p3), %v911_v0  ;;  %v915_v5 = vld [vmem:[%s1140_s1 + $0x8] sm:$0xff] (!%p230_p3)   ;;  %v918_v8 = vld [vmem:[%s1140_s1 + $0x10] sm:$0xff] (!%p230_p3)   ;;  %vm339_vm1 = vcmask (!%p230_p3), 1040384   ;;  %v353_v35 = vrot.slane (!%p230_p3), %v959_v2, 1 }
   0x8   : > { %v913_v3 = vld [vmem:[%s1140_s1 + $0x80] sm:$0xff] (!%p230_p3)   ;;  %834 = vmatpush3.bf16.msra.mxu0 (!%p230_p3), %v912_v1  ;;  %v916_v6 = vld [vmem:[%s1140_s1 + $0x88] sm:$0xff] (!%p230_p3)   ;;  %v919_v9 = vld [vmem:[%s1140_s1 + $0x90] sm:$0xff] (!%p230_p3)   ;;  %880 = vmatprep.mubr.msk.bf16.mxu1 (!%p230_p3), %vm960_vm0, %v959_v2  ;;  %vm346_vm3 = vcmask (!%p230_p3), 1046528   ;;  %vm961_vm4 = vmmov (!%p230_p3), 1  }
   0x9   : > { %865 = vmatpush3.bf16.msra.mxu1 (!%p230_p3), %v913_v3  ;;  %835 = vmatprep.subr.bf16.mxu0 (!%p230_p3), %v914_v4  ;;  %v920_v10 = vld [vmem:[%s1140_s1 + $0x58] sm:$0xff] (!%p230_p3)   ;;  %v923_v13 = vld [vmem:[%s1140_s1 + $0x60] sm:$0xff] (!%p230_p3)   ;;  %v926_v16 = vld [vmem:[%s1140_s1 + $0x68] sm:$0xff] (!%p230_p3)  }
   0xa   : > { %866 = vmatprep.subr.bf16.mxu1 (!%p230_p3), %v959_v2  ;;  %v921_v11 = vld [vmem:[%s1140_s1 + $0x18] sm:$0xff] (!%p230_p3)   ;;  %v924_v14 = vld [vmem:[%s1140_s1 + $0x20] sm:$0xff] (!%p230_p3)   ;;  %v927_v17 = vld [vmem:[%s1140_s1 + $0x28] sm:$0xff] (!%p230_p3)  }
   0xb   : > { %v922_v12 = vld [vmem:[%s1140_s1 + $0x98] sm:$0xff] (!%p230_p3)   ;;  %v925_v15 = vld [vmem:[%s1140_s1 + $0xa0] sm:$0xff] (!%p230_p3)   ;;  %v928_v18 = vld [vmem:[%s1140_s1 + $0xa8] sm:$0xff] (!%p230_p3)  }
   0xc   : > { %836 = vmatpush3.bf16.msra.mxu0 (!%p230_p3), %v915_v5  ;;  %v929_v19 = vld [vmem:[%s1140_s1 + $0x70] sm:$0xff] (!%p230_p3)   ;;  %v932_v22 = vld [vmem:[%s1140_s1 + $0x78] sm:$0xff] (!%p230_p3)   ;;  %v831_v25 = vld [vmem:[%s1142_s3] ss:$0 sm:$0xff] (!%p230_p3) }
   0xd   : > { %867 = vmatpush3.bf16.msra.mxu1 (!%p230_p3), %v916_v6  ;;  %837 = vmatprep.subr.bf16.mxu0 (!%p230_p3), %v917_v7  ;;  %v930_v20 = vld [vmem:[%s1140_s1 + $0x30] sm:$0xff] (!%p230_p3)   ;;  %v832_v28 = vld [vmem:[%s1143_s4] ss:$0 sm:$0xff] (!%p230_p3)  ;;  %v933_v31 = vld [vmem:[%s1140_s1 + $0x38] sm:$0xff] (!%p230_p3)  }
   0xe   : > { %868 = vmatprep.subr.bf16.mxu1 %v959_v2  ;;  %s1151_s21 = smov (!%p267_p4, %s949_s21), 1  ;;  %v931_v21 = vld [vmem:[%s1140_s1 + $0xb0] sm:$0xff]   ;;  %v934_v34 = vld [vmem:[%s1140_s1 + $0xb8] sm:$0xff]   ;;  %vm823_vm2 = vmneg %vm339_vm1 }
   0xf   : > { %s829_s13 = sshll.u32 %s1151_s21, 4  ;;  %vm824_vm5 = vmpackc.low %vm961_vm4, %vm823_vm2  ;;  %v798_v49 = vld [vmem:[%s1141_s2] ss:$0 sm:$0xff] }
  0x10   : > { %838 = vmatpush3.bf16.msra.mxu0 %v918_v8  ;;  %s271_s26 = scalar_lea.vmem %s1139_s0, %s829_s13 }
  0x11   : > { %869 = vmatpush3.bf16.msra.mxu1 %v919_v9  ;;  %839 = vmatprep.subr.bf16.mxu0 %v920_v10  ;;  %v289_v23 = vld [vmem:[%s271_s26] sm:$0xff]  ;;  %v290_v24 = vld [vmem:[%s271_s26 + $0x8] sm:$0xff]  ;;  %s280_s26 = scalar_lea.vmem %s1144_s5, %s829_s13  ;;  %s796_s13 = sshll.u32 %s1151_s21, 1 }
  0x12   : > { %870 = vmatprep.subr.bf16.mxu1 %v959_v2  ;;  %v298_v26 = vmul.f32 %v831_v25, %v289_v23  ;;  %v299_v27 = vmul.f32 %v831_v25, %v290_v24  ;;  %s285_s29 = scalar_lea.vmem %s1145_s6, %s796_s13 }
  0x14   : > { %840 = vmatpush3.bf16.msra.mxu0 %v921_v11  ;;  %v307_v29 = vadd.f32 %v832_v28, %v298_v26  ;;  %v308_v30 = vadd.f32 %v832_v28, %v299_v27 }
  0x15   : > { %871 = vmatpush3.bf16.msra.mxu1 %v922_v12  ;;  %841 = vmatprep.subr.bf16.mxu0 %v923_v13 }
  0x16   : > { %872 = vmatprep.subr.bf16.mxu1 %v959_v2  ;;  %v309_v32 = vmax.f32 %v307_v29, 0.0  ;;  %v310_v33 = vmax.f32 %v308_v30, 0.0 }
  0x18   : > { %842 = vmatpush3.bf16.msra.mxu0 %v924_v14  ;;  %v340_v36 = vrot.slane %v309_v32, 7  ;;  %v341_v37 = vrot.slane %v310_v33, 7  ;;  %v347_v38 = vrot.slane %v309_v32, 1  ;;  %v348_v39 = vrot.slane %v310_v33, 1 }
  0x19   : > { %873 = vmatpush3.bf16.msra.mxu1 %v925_v15  ;;  %843 = vmatprep.subr.bf16.mxu0 %v926_v16  ;;  %v357_v40 = vpack.c.bf16 %v310_v33, %v309_v32 }
  0x1a   : > { %874 = vmatprep.subr.bf16.mxu1 %v959_v2  ;;  %v342_v41 = vsel %vm339_vm1, %v340_v36, %v341_v37  ;;  %v349_v42 = vsel %vm346_vm3, %v347_v38, %v348_v39  ;;  %v355_v43 = vsel %vm346_vm3, %v348_v39, %v353_v35 }
  0x1b   : > { %590 = vmatprep.mubr.bf16.mxu0 %v357_v40  ;;  %v825_v44 = vpack.c.bf16 %v342_v41, %v340_v36  ;;  %v358_v45 = vpack.c.bf16 %v355_v43, %v349_v42 }
  0x1c   : > { %844 = vmatpush3.bf16.msra.mxu0 %v927_v17 }
  0x1d   : > { %875 = vmatpush3.bf16.msra.mxu1 %v928_v18  ;;  %845 = vmatprep.subr.bf16.mxu0 %v929_v19 }
  0x1e   : > { %876 = vmatprep.subr.bf16.mxu1 %v959_v2 }
  0x20   : > { %846 = vmatpush3.bf16.msra.mxu0 %v930_v20 }
  0x21   : > { %877 = vmatpush3.bf16.msra.mxu1 %v931_v21  ;;  %847 = vmatprep.subr.bf16.mxu0 %v932_v22 }
  0x22   : > { %878 = vmatprep.subr.bf16.mxu1 %v959_v2 }
  0x24   : > { %848 = vmatpush3.bf16.msra.mxu0 %v933_v31 }
  0x25   : > { %879 = vmatpush3.bf16.msra.mxu1 %v934_v34 }
  0x27   : > { %826 = vmatmul.mubr.msk.bf16.vlgmr.msra.gmra.mrb[0].mxu0 %vm824_vm5, %v825_v44 }
  0x28   : > { %881 = vmatmul.mubr.bf16.vlgmr.msra.gmra.mrb[0].mxu1 %v358_v45 }
  0xfa   : > { %v849_v46 = vpop.f32.mrb[0].mxu0 }
  0xfb   : > { %v633_v47 = vpop.f32.mrb[0].mxu1  ;;  %v850_v48 = vpop.f32.mrb[1].mxu0 }
  0xfc   : > { %v882_v50 = vpop.f32.mrb[1].mxu1  ;;  %v851_v51 = vadd.f32 %v850_v48, %v849_v46  ;;  %v852_v52 = vpop.f32.mrb[2].mxu0 }
  0xfd   : > { %v636_v53 = vpop.f32.mrb[2].mxu1  ;;  %v853_v54 = vpop.f32.mrb[3].mxu0 }
  0xfe   : > { %v883_v55 = vpop.f32.mrb[3].mxu1  ;;  %v593_v56 = vadd.f32 %v851_v51, %v798_v49  ;;  %v854_v57 = vadd.f32 %v853_v54, %v852_v52 }
 0x100   : > { %v634_v58 = vadd.f32 %v633_v47, %v593_v56  ;;  %v596_v59 = vadd.f32 %v854_v57, %v798_v49 }
 0x102   : > { %640 = vst [vmem:[%s280_s26] sm:$0xff] %v634_v58  ;;  %v637_v60 = vadd.f32 %v636_v53, %v596_v59  ;;  %v649_v61 = vmul.f32 %v634_v58, %v634_v58 }
 0x104   : > { %641 = vst [vmem:[%s280_s26 + $0x8] sm:$0xff] %v637_v60  ;;  %v642_v62 = vadd.f32 %v637_v60, %v634_v58  ;;  %v650_v63 = vmul.f32 %v637_v60, %v637_v60 }
 0x106   : > { %v643_v0 = vrot.slane %v642_v62, 4  ;;  %v651_v1 = vadd.f32 %v650_v63, %v649_v61 }
 0x108   : > { %v644_v2 = vadd.f32 %v643_v0, %v642_v62  ;;  %v652_v3 = vrot.slane %v651_v1, 4 }
 0x10a   : > { %v645_v4 = vrot.slane %v644_v2, 2  ;;  %v653_v5 = vadd.f32 %v652_v3, %v651_v1 }
 0x10c   : > { %v646_v6 = vadd.f32 %v645_v4, %v644_v2  ;;  %v654_v7 = vrot.slane %v653_v5, 2 }
 0x10e   : > { %v647_v8 = vrot.slane %v646_v6, 1  ;;  %v655_v9 = vadd.f32 %v654_v7, %v653_v5 }
 0x110   : > { %v656_v10 = vrot.slane %v655_v9, 1  ;;  %v648_v11 = vadd.f32 %v647_v8, %v646_v6 }
 0x112   : > { %v657_v12 = vadd.f32 %v656_v10, %v655_v9 }
 0x114   : > { %v658_v13 = vsel %vm339_vm1, %v648_v11, %v657_v12 }
 0x115   : > { %663 = vst [vmem:[%s285_s29] sm:$0x3] %v658_v13 }
 0x116 PF: > { %s17_s23 = sadd.s32 1, %s957_s23   ;;  %s1146_s21 = smov %s953_s22 }
 0x117   : > { %p14_p5 = scmp.ge.s32.totalorder %s17_s23, 4   ;;  %s1147_s22 = smov %s1149_s24 }
 0x119   :  { %16 = sbr.rel (!%p14_p5) target bundleno = 2 (0x2), region = 93 }

// kernel: vae_forward.9
= control target key start
LH: loop header
LB: loop body
LE: loop exit
PB: predicated region body
PF: predicated region fallthrough
CT: control target
= control target key end

     0   :  { %s1133_s24 = smov 0   ;;  %s1135_s25 = smov 0   ;;  %s1266_s0 = inlined_call_operand.vmem [shape: f32[2,16,128], index: 0, kind: input, shape index: {}]   ;;  %s1267_s1 = inlined_call_operand.vmem [shape: bf16[384,128], index: 1, kind: input, shape index: {}]   ;;  %s1268_s2 = inlined_call_operand.vmem [shape: f32[1,128], index: 2, kind: input, shape index: {}]   ;;  %s1269_s3 = inlined_call_operand.vmem [shape: f32[1,128], index: 3, kind: input, shape index: {}]   ;;  %s1270_s4 = inlined_call_operand.vmem [shape: f32[1,128], index: 4, kind: input, shape index: {}]   ;;  %s1271_s5 = inlined_call_operand.vmem [shape: bf16[32,16], index: 5, kind: input, shape index: {}]   ;;  %s1272_s6 = inlined_call_operand.vmem [shape: f32[2,32,128], index: 6, kind: output, shape index: {0}]   ;;  %s1273_s7 = inlined_call_operand.vmem [shape: f32[2,2,128], index: 7, kind: output, shape index: {1}]  }
   0x1   :  { %s1137_s26 = smov 0  }
   0x2 LB: > { %s30_s3 = sadd.s32 1, %s1085_s25  ;;  %p904_p0 = scmp.ge.s32.totalorder %s1089_s26, 1  ;;  %s1089_s26 = sphi %s1137_s26, %s18_s26   ;;  %s1085_s25 = sphi %s1135_s25, %s1275_s25   ;;  %s1081_s24 = sphi %s1133_s24, %s1274_s24  }
   0x3   : > { %p32_p1 = scmp.ge.s32.totalorder %s30_s3, 2  ;;  %p254_p2 = scmp.lt.s32.totalorder %s1089_s26, 3 }
   0x5   : > { %s1277_s3 = smov (%p32_p1, %s30_s3), 0  ;;  %p255_p3 = pnand %p904_p0, %p254_p2 }
   0x6   : > { %p294_p4 = scmp.lt.s32.totalorder (!%p255_p3), %s1081_s24, 1  ;;  %v1041_v0 = vld [vmem:[%s1271_s5] sm:$0xff] (!%p255_p3)   ;;  %vm353_vm0 = vcmask (!%p255_p3), 130048   ;;  %v1046_v6 = vld [vmem:[%s1267_s1 + $0x48] sm:$0xff] (!%p255_p3)   ;;  %v1049_v10 = vld [vmem:[%s1267_s1 + $0x50] sm:$0xff] (!%p255_p3)   ;;  %vm426_vm1 = vcmask (!%p255_p3), 1046528  }
   0x7   : > { %258 = sbr.rel (%p255_p3) target bundleno = 491 (0x1eb), region = 44  ;;  %991 = vmatprep.mubr.msk.bf16.mxu0 (!%p255_p3), %vm353_vm0, %v1041_v0  ;;  %v1043_v1 = vld [vmem:[%s1267_s1 + $0x40] sm:$0xff] (!%p255_p3)   ;;  %v1047_v8 = vld [vmem:[%s1267_s1 + $0x8] sm:$0xff] (!%p255_p3)   ;;  %v1050_v11 = vld [vmem:[%s1267_s1 + $0x10] sm:$0xff] (!%p255_p3)   ;;  %v1091_v31 = vmov (!%p255_p3), 0.0   ;;  %vm413_vm2 = vcmask (!%p255_p3), 1040384  }
   0x8   : > { %v1044_v2 = vld [vmem:[%s1267_s1] sm:$0xff] (!%p255_p3)   ;;  %951 = vmatprep.subr.bf16.mxu1 (!%p255_p3), %v1043_v1  ;;  %v1042_v9 = vld [vmem:[%s1271_s5 + $0x8] sm:$0xff] (!%p255_p3)   ;;  %v1052_v13 = vld [vmem:[%s1267_s1 + $0x58] sm:$0xff] (!%p255_p3)   ;;  %v439_v32 = vrot.slane (!%p255_p3), %v1091_v31, 1  ;;  %vm1092_vm4 = vmmov (!%p255_p3), 1  }
   0x9   : > { %952 = vmatpush3.bf16.msra.mxu1 (!%p255_p3), %v1044_v2  ;;  %v1045_v3 = vld [vmem:[%s1267_s1 + $0x80] sm:$0xff] (!%p255_p3)   ;;  %v1048_v12 = vld [vmem:[%s1267_s1 + $0x88] sm:$0xff] (!%p255_p3)   ;;  %v1053_v14 = vld [vmem:[%s1267_s1 + $0x18] sm:$0xff] (!%p255_p3)  }
   0xa   : > { %953 = vmatprep.subr.bf16.mxu1 (!%p255_p3), %v1046_v6  ;;  %v1051_v15 = vld [vmem:[%s1267_s1 + $0x90] sm:$0xff] (!%p255_p3)   ;;  %v1055_v16 = vld [vmem:[%s1267_s1 + $0x60] sm:$0xff] (!%p255_p3)   ;;  %v1058_v18 = vld [vmem:[%s1267_s1 + $0x68] sm:$0xff] (!%p255_p3)  }
   0xb   : > { %v1056_v17 = vld [vmem:[%s1267_s1 + $0x20] sm:$0xff] (!%p255_p3)   ;;  %v1054_v19 = vld [vmem:[%s1267_s1 + $0x98] sm:$0xff] (!%p255_p3)   ;;  %v1059_v20 = vld [vmem:[%s1267_s1 + $0x28] sm:$0xff] (!%p255_p3)  }
   0xc   : > { %v1057_v21 = vld [vmem:[%s1267_s1 + $0xa0] sm:$0xff] (!%p255_p3)   ;;  %v1060_v22 = vld [vmem:[%s1267_s1 + $0xa8] sm:$0xff] (!%p255_p3)   ;;  %v1061_v23 = vld [vmem:[%s1267_s1 + $0x70] sm:$0xff] (!%p255_p3)  }
   0xd   : > { %954 = vmatpush3.bf16.msra.mxu1 (!%p255_p3), %v1047_v8  ;;  %v1062_v24 = vld [vmem:[%s1267_s1 + $0x30] sm:$0xff] (!%p255_p3)   ;;  %v1064_v26 = vld [vmem:[%s1267_s1 + $0x78] sm:$0xff] (!%p255_p3)   ;;  %vm940_vm3 = vmneg (!%p255_p3), %vm413_vm2 }
   0xe   : > { %s1279_s24 = smov (!%p294_p4, %s1081_s24), 1  ;;  %955 = vmatprep.subr.bf16.mxu1 %v1049_v10  ;;  %v1063_v25 = vld [vmem:[%s1267_s1 + $0xb0] sm:$0xff]   ;;  %v1065_v27 = vld [vmem:[%s1267_s1 + $0x38] sm:$0xff]   ;;  %vm941_vm5 = vmpackc.low %vm1092_vm4, %vm940_vm3 }
   0xf   : > { %s946_s9 = sshll.u32 %s1279_s24, 4  ;;  %v1066_v28 = vld [vmem:[%s1267_s1 + $0xb8] sm:$0xff]   ;;  %v915_v59 = vld [vmem:[%s1268_s2] ss:$0 sm:$0xff]  ;;  %s947_s19 = sshll.u32 %s1279_s24, 5 }
  0x10   : > { %s298_s12 = scalar_lea.vmem %s1266_s0, %s946_s9  ;;  %s307_s22 = scalar_lea.vmem %s1272_s6, %s947_s19 }
  0x11   : > { %v316_v4 = vld [vmem:[%s298_s12] sm:$0xff]  ;;  %v317_v5 = vld [vmem:[%s298_s12 + $0x8] sm:$0xff]  ;;  %956 = vmatpush3.bf16.msra.mxu1 %v1050_v11  ;;  %s909_s23 = sshll.u32 %s1279_s24, 1 }
  0x12   : > { %v342_v7 = vpack.c.bf16 %v317_v5, %v316_v4  ;;  %957 = vmatprep.subr.bf16.mxu1 %v1052_v13  ;;  %s312_s28 = scalar_lea.vmem %s1273_s7, %s909_s23 }
  0x14   : > { %989 = vmatprep.subr.bf16.mxu0 %v342_v7 }
  0x15   : > { %990 = vmatpush3.bf16.msra.mxu0 %v342_v7  ;;  %958 = vmatpush3.bf16.msra.mxu1 %v1053_v14 }
  0x16   : > { %995 = vmatprep.subr.bf16.mxu0 %v1045_v3  ;;  %959 = vmatprep.subr.bf16.mxu1 %v1055_v16 }
  0x18   : > { %992 = vmatmul.mubr.msk.bf16.vlgmr.msra.gmra.mrb[0].mxu0 %vm353_vm0, %v1042_v9 }
  0x19   : > { %996 = vmatpush3.bf16.msra.mxu0 %v1045_v3  ;;  %960 = vmatpush3.bf16.msra.mxu1 %v1056_v17 }
  0x1a   : > { %997 = vmatprep.subr.bf16.mxu0 %v1048_v12  ;;  %961 = vmatprep.subr.bf16.mxu1 %v1058_v18 }
  0x1d   : > { %998 = vmatpush3.bf16.msra.mxu0 %v1048_v12  ;;  %962 = vmatpush3.bf16.msra.mxu1 %v1059_v20 }
  0x1e   : > { %999 = vmatprep.subr.bf16.mxu0 %v1051_v15  ;;  %963 = vmatprep.subr.bf16.mxu1 %v1061_v23 }
  0x21   : > { %1000 = vmatpush3.bf16.msra.mxu0 %v1051_v15  ;;  %964 = vmatpush3.bf16.msra.mxu1 %v1062_v24 }
  0x22   : > { %1001 = vmatprep.subr.bf16.mxu0 %v1054_v19  ;;  %965 = vmatprep.subr.bf16.mxu1 %v1064_v26 }
  0x25   : > { %1002 = vmatpush3.bf16.msra.mxu0 %v1054_v19  ;;  %966 = vmatpush3.bf16.msra.mxu1 %v1065_v27 }
  0x26   : > { %1003 = vmatprep.subr.bf16.mxu0 %v1057_v21 }
  0x29   : > { %1004 = vmatpush3.bf16.msra.mxu0 %v1057_v21 }
  0x2a   : > { %1005 = vmatprep.subr.bf16.mxu0 %v1060_v22 }
  0x2d   : > { %1006 = vmatpush3.bf16.msra.mxu0 %v1060_v22 }
  0x2e   : > { %1007 = vmatprep.subr.bf16.mxu0 %v1063_v25 }
  0x31   : > { %1008 = vmatpush3.bf16.msra.mxu0 %v1063_v25 }
  0x32   : > { %1009 = vmatprep.subr.bf16.mxu0 %v1066_v28 }
  0x35   : > { %1010 = vmatpush3.bf16.msra.mxu0 %v1066_v28 }
  0xeb   : > { %v993_v29 = vpop.f32.mrb[0].mxu0 }
  0xec   : > { %v394_v30 = vpop.f32.mrb[1].mxu0  ;;  %v417_v33 = vrot.slane %v993_v29, 7  ;;  %v430_v34 = vrot.slane %v993_v29, 1 }
  0xed   : > { %v994_v35 = vpop.f32.mrb[2].mxu0  ;;  %v414_v36 = vrot.slane %v394_v30, 7  ;;  %v427_v41 = vrot.slane %v394_v30, 1 }
  0xee   : > { %v419_v37 = vrot.slane %v994_v35, 7  ;;  %v432_v38 = vrot.slane %v994_v35, 1  ;;  %v446_v39 = vpack.c.bf16 %v994_v35, %v993_v29  ;;  %v397_v40 = vpop.f32.mrb[3].mxu0 }
  0xef   : > { %v415_v42 = vrot.slane %v397_v40, 7  ;;  %v428_v43 = vrot.slane %v397_v40, 1  ;;  %v443_v44 = vpack.c.bf16 %v397_v40, %v394_v30 }
  0xf0   : > { %v433_v45 = vsel %vm426_vm1, %v430_v34, %v432_v38  ;;  %v441_v46 = vsel %vm426_vm1, %v432_v38, %v439_v32  ;;  %v420_v47 = vsel %vm413_vm2, %v417_v33, %v419_v37 }
  0xf1   : > { %v416_v48 = vsel %vm413_vm2, %v414_v36, %v415_v42  ;;  %679 = vmatprep.mubr.bf16.mxu1 %v443_v44  ;;  %v429_v49 = vsel %vm426_vm1, %v427_v41, %v428_v43  ;;  %v431_v50 = vsel %vm426_vm1, %v428_v43, %v430_v34  ;;  %v447_v51 = vpack.c.bf16 %v441_v46, %v433_v45 }
  0xf2   : > { %v942_v52 = vpack.c.bf16 %v416_v48, %v414_v36  ;;  %v444_v53 = vpack.c.bf16 %v431_v50, %v429_v49  ;;  %v418_v54 = vsel %vm413_vm2, %v415_v42, %v417_v33 }
  0xf3   : > { %v445_v55 = vpack.c.bf16 %v420_v47, %v418_v54 }
  0xf4   : > { %943 = vmatmul.mubr.msk.bf16.vlgmr.msra.gmra.mrb[0].mxu1 %vm941_vm5, %v942_v52  ;;  %1011 = vmatprep.mubr.bf16.mxu0 %v444_v53 }
  0xf5   : > { %687 = vmatprep.mubr.bf16.mxu1 %v446_v39  ;;  %1012 = vmatmul.mubr.bf16.vlgmr.msra.gmra.mrb[4].mxu0 %v447_v51 }
  0xfc   : > { %688 = vmatmul.mubr.bf16.gmra.mrb[4].mxu1 %v445_v55 }
 0x1c7   : > { %v967_v56 = vpop.f32.mrb[0].mxu1 }
 0x1c8   : > { %v968_v57 = vpop.f32.mrb[1].mxu1  ;;  %v1013_v58 = vpop.f32.mrb[4].mxu0 }
 0x1c9   : > { %v969_v60 = vadd.f32 %v968_v57, %v967_v56  ;;  %v970_v61 = vpop.f32.mrb[2].mxu1  ;;  %v730_v62 = vpop.f32.mrb[5].mxu0 }
 0x1ca   : > { %v971_v63 = vpop.f32.mrb[3].mxu1  ;;  %v1014_v0 = vpop.f32.mrb[6].mxu0 }
 0x1cb   : > { %v682_v1 = vadd.f32 %v969_v60, %v915_v59  ;;  %v972_v2 = vadd.f32 %v971_v63, %v970_v61  ;;  %v733_v3 = vpop.f32.mrb[7].mxu0 }
 0x1cd   : > { %v731_v4 = vadd.f32 %v730_v62, %v682_v1  ;;  %v685_v5 = vadd.f32 %v972_v2, %v915_v59 }
 0x1cf   : > { %745 = vst [vmem:[%s307_s22] sm:$0xff] %v731_v4  ;;  %v734_v6 = vadd.f32 %v733_v3, %v685_v5  ;;  %v973_v7 = vpop.f32.mrb[4].mxu1  ;;  %v758_v9 = vmul.f32 %v731_v4, %v731_v4 }
 0x1d0   : > { %v974_v8 = vpop.f32.mrb[5].mxu1 }
 0x1d1   : > { %746 = vst [vmem:[%s307_s22 + $0x8] sm:$0xff] %v734_v6  ;;  %v749_v10 = vadd.f32 %v734_v6, %v731_v4  ;;  %v759_v11 = vmul.f32 %v734_v6, %v734_v6  ;;  %v975_v12 = vadd.f32 %v974_v8, %v973_v7  ;;  %v976_v13 = vpop.f32.mrb[6].mxu1 }
 0x1d2   : > { %v977_v14 = vpop.f32.mrb[7].mxu1 }
 0x1d3   : > { %v762_v15 = vadd.f32 %v759_v11, %v758_v9  ;;  %v690_v16 = vadd.f32 %v975_v12, %v915_v59  ;;  %v978_v17 = vadd.f32 %v977_v14, %v976_v13 }
 0x1d5   : > { %v739_v18 = vadd.f32 %v1013_v58, %v690_v16  ;;  %v693_v19 = vadd.f32 %v978_v17, %v915_v59 }
 0x1d7   : > { %747 = vst [vmem:[%s307_s22 + $0x10] sm:$0xff] %v739_v18  ;;  %v750_v20 = vadd.f32 %v749_v10, %v739_v18  ;;  %v760_v21 = vmul.f32 %v739_v18, %v739_v18  ;;  %v742_v22 = vadd.f32 %v1014_v0, %v693_v19 }
 0x1d9   : > { %v763_v23 = vadd.f32 %v762_v15, %v760_v21  ;;  %748 = vst [vmem:[%s307_s22 + $0x18] sm:$0xff] %v742_v22  ;;  %v751_v24 = vadd.f32 %v750_v20, %v742_v22  ;;  %v761_v25 = vmul.f32 %v742_v22, %v742_v22 }
 0x1db   : > { %v752_v26 = vrot.slane %v751_v24, 4  ;;  %v764_v27 = vadd.f32 %v763_v23, %v761_v25 }
 0x1dd   : > { %v753_v28 = vadd.f32 %v752_v26, %v751_v24  ;;  %v765_v29 = vrot.slane %v764_v27, 4 }
 0x1df   : > { %v754_v30 = vrot.slane %v753_v28, 2  ;;  %v766_v31 = vadd.f32 %v765_v29, %v764_v27 }
 0x1e1   : > { %v755_v32 = vadd.f32 %v754_v30, %v753_v28  ;;  %v767_v33 = vrot.slane %v766_v31, 2 }
 0x1e3   : > { %v756_v34 = vrot.slane %v755_v32, 1  ;;  %v768_v35 = vadd.f32 %v767_v33, %v766_v31 }
 0x1e5   : > { %v769_v36 = vrot.slane %v768_v35, 1  ;;  %v757_v37 = vadd.f32 %v756_v34, %v755_v32 }
 0x1e7   : > { %v770_v38 = vadd.f32 %v769_v36, %v768_v35 }
 0x1e9   : > { %v771_v39 = vsel %vm413_vm2, %v757_v37, %v770_v38 }
 0x1ea   : > { %776 = vst [vmem:[%s312_s28] sm:$0x3] %v771_v39 }
 0x1eb PF: > { %s18_s26 = sadd.s32 1, %s1089_s26   ;;  %s1274_s24 = smov %s1085_s25 }
 0x1ec   : > { %p15_p5 = scmp.ge.s32.totalorder %s18_s26, 4   ;;  %s1275_s25 = smov %s1277_s3 }
 0x1ee   :  { %17 = sbr.rel (!%p15_p5) target bundleno = 2 (0x2), region = 97 }

// kernel: vae_forward.10
= control target key start
LH: loop header
LB: loop body
LE: loop exit
PB: predicated region body
PF: predicated region fallthrough
CT: control target
= control target key end

     0   :  { %s1321_s24 = smov 0   ;;  %s1323_s25 = smov 0   ;;  %s1496_s0 = inlined_call_operand.vmem [shape: f32[2,32,128], index: 0, kind: input, shape index: {}]   ;;  %s1497_s1 = inlined_call_operand.vmem [shape: bf16[384,128], index: 1, kind: input, shape index: {}]   ;;  %s1498_s2 = inlined_call_operand.vmem [shape: f32[1,128], index: 2, kind: input, shape index: {}]   ;;  %s1499_s3 = inlined_call_operand.vmem [shape: f32[1,128], index: 3, kind: input, shape index: {}]   ;;  %s1500_s4 = inlined_call_operand.vmem [shape: f32[1,128], index: 4, kind: input, shape index: {}]   ;;  %s1501_s5 = inlined_call_operand.vmem [shape: bf16[64,32], index: 5, kind: input, shape index: {}]   ;;  %s1502_s6 = inlined_call_operand.vmem [shape: f32[2,64,128], index: 6, kind: output, shape index: {0}]   ;;  %s1503_s7 = inlined_call_operand.vmem [shape: f32[2,2,128], index: 7, kind: output, shape index: {1}]  }
   0x1   :  { %s1325_s26 = smov 0  }
   0x2 LB: > { %s30_s27 = sadd.s32 1, %s1273_s25  ;;  %p1057_p0 = scmp.ge.s32.totalorder %s1277_s26, 1  ;;  %s1277_s26 = sphi %s1325_s26, %s18_s26   ;;  %s1273_s25 = sphi %s1323_s25, %s1505_s25   ;;  %s1269_s24 = sphi %s1321_s24, %s1504_s24  }
   0x3   : > { %p32_p1 = scmp.ge.s32.totalorder %s30_s27, 2  ;;  %p254_p2 = scmp.lt.s32.totalorder %s1277_s26, 3 }
   0x5   : > { %s1507_s27 = smov (%p32_p1, %s30_s27), 0  ;;  %p255_p3 = pnand %p1057_p0, %p254_p2 }
   0x6   : > { %p294_p4 = scmp.lt.s32.totalorder (!%p255_p3), %s1269_s24, 1  ;;  %v1227_v0 = vld [vmem:[%s1501_s5] sm:$0xff] (!%p255_p3)   ;;  %vm402_vm0 = vcmask (!%p255_p3), 261120   ;;  %v1233_v13 = vld [vmem:[%s1497_s1 + $0x48] sm:$0xff] (!%p255_p3)   ;;  %v1236_v22 = vld [vmem:[%s1497_s1 + $0x50] sm:$0xff] (!%p255_p3)   ;;  %vm513_vm1 = vcmask (!%p255_p3), 1046528  }
   0x7   : > { %258 = sbr.rel (%p255_p3) target bundleno = 517 (0x205), region = 44  ;;  %v1105_v1 = vld [vmem:[%s1499_s3] ss:$0 sm:$0xff] (!%p255_p3)  ;;  %1169 = vmatprep.mubr.msk.bf16.mxu0 (!%p255_p3), %vm402_vm0, %v1227_v0  ;;  %v1234_v17 = vld [vmem:[%s1497_s1 + $0x8] sm:$0xff] (!%p255_p3)   ;;  %v1237_v24 = vld [vmem:[%s1497_s1 + $0x10] sm:$0xff] (!%p255_p3)   ;;  %vm488_vm2 = vcmask (!%p255_p3), 1040384  }
   0x8   : > { %v1106_v2 = vld [vmem:[%s1500_s4] ss:$0 sm:$0xff] (!%p255_p3)  ;;  %v1239_v27 = vld [vmem:[%s1497_s1 + $0x58] sm:$0xff] (!%p255_p3)   ;;  %v1228_v29 = vld [vmem:[%s1501_s5 + $0x8] sm:$0xff] (!%p255_p3)   ;;  %vm1279_vm4 = vmmov (!%p255_p3), 1  }
   0x9   : > { %v1231_v3 = vld [vmem:[%s1497_s1 + $0x40] sm:$0xff] (!%p255_p3)   ;;  %v1240_v30 = vld [vmem:[%s1497_s1 + $0x18] sm:$0xff] (!%p255_p3)   ;;  %v1229_v32 = vld [vmem:[%s1501_s5 + $0x10] sm:$0xff] (!%p255_p3)  }
   0xa   : > { %1113 = vmatprep.subr.bf16.mxu1 (!%p255_p3), %v1231_v3  ;;  %v1232_v11 = vld [vmem:[%s1497_s1] sm:$0xff] (!%p255_p3)   ;;  %v1238_v33 = vld [vmem:[%s1497_s1 + $0x88] sm:$0xff] (!%p255_p3)   ;;  %v1241_v36 = vld [vmem:[%s1497_s1 + $0x90] sm:$0xff] (!%p255_p3)  }
   0xb   : > { %1114 = vmatpush3.bf16.msra.mxu1 (!%p255_p3), %v1232_v11  ;;  %v1235_v28 = vld [vmem:[%s1497_s1 + $0x80] sm:$0xff] (!%p255_p3)   ;;  %v1245_v35 = vld [vmem:[%s1497_s1 + $0x68] sm:$0xff] (!%p255_p3)   ;;  %v1230_v38 = vld [vmem:[%s1501_s5 + $0x18] sm:$0xff] (!%p255_p3)  }
   0xc   : > { %1115 = vmatprep.subr.bf16.mxu1 (!%p255_p3), %v1233_v13  ;;  %v1242_v31 = vld [vmem:[%s1497_s1 + $0x60] sm:$0xff] (!%p255_p3)   ;;  %v1246_v37 = vld [vmem:[%s1497_s1 + $0x28] sm:$0xff] (!%p255_p3)   ;;  %v1244_v39 = vld [vmem:[%s1497_s1 + $0x98] sm:$0xff] (!%p255_p3)  }
   0xd   : > { %v1243_v34 = vld [vmem:[%s1497_s1 + $0x20] sm:$0xff] (!%p255_p3)   ;;  %v1248_v41 = vld [vmem:[%s1497_s1 + $0x70] sm:$0xff] (!%p255_p3)   ;;  %v1250_v43 = vld [vmem:[%s1497_s1 + $0xa8] sm:$0xff] (!%p255_p3)  }
   0xe   : > { %s1509_s24 = smov (!%p294_p4, %s1269_s24), 1  ;;  %v1247_v40 = vld [vmem:[%s1497_s1 + $0xa0] sm:$0xff]   ;;  %v1249_v42 = vld [vmem:[%s1497_s1 + $0x30] sm:$0xff]   ;;  %v1251_v44 = vld [vmem:[%s1497_s1 + $0x78] sm:$0xff]  }
   0xf   : > { %s1103_s9 = sshll.u32 %s1509_s24, 5  ;;  %1116 = vmatpush3.bf16.msra.mxu1 %v1234_v17  ;;  %v1252_v45 = vld [vmem:[%s1497_s1 + $0x38] sm:$0xff]   ;;  %v1253_v46 = vld [vmem:[%s1497_s1 + $0xb0] sm:$0xff]   ;;  %vm1097_vm3 = vmneg %vm488_vm2  ;;  %s1104_s14 = sshll.u32 %s1509_s24, 6 }
  0x10   : > { %s298_s16 = scalar_lea.vmem %s1496_s0, %s1103_s9  ;;  %1117 = vmatprep.subr.bf16.mxu1 %v1236_v22  ;;  %v1254_v47 = vld [vmem:[%s1497_s1 + $0xb8] sm:$0xff]   ;;  %vm1098_vm5 = vmpackc.low %vm1279_vm4, %vm1097_vm3  ;;  %s1465_s17 = scalar_lea.vmem %s1502_s6, %s1104_s14 }
  0x11   : > { %v316_v4 = vld [vmem:[%s298_s16] sm:$0xff]  ;;  %v317_v5 = vld [vmem:[%s298_s16 + $0x8] sm:$0xff]  ;;  %v318_v6 = vld [vmem:[%s298_s16 + $0x10] sm:$0xff]  ;;  %s1062_s18 = sshll.u32 %s1509_s24, 1 }
  0x12   : > { %v327_v7 = vmul.f32 %v1105_v1, %v316_v4  ;;  %v328_v8 = vmul.f32 %v1105_v1, %v317_v5  ;;  %v319_v9 = vld [vmem:[%s298_s16 + $0x18] sm:$0xff]  ;;  %v329_v10 = vmul.f32 %v1105_v1, %v318_v6  ;;  %s312_s21 = scalar_lea.vmem %s1503_s7, %s1062_s18 }
  0x13   : > { %v330_v12 = vmul.f32 %v1105_v1, %v319_v9  ;;  %1118 = vmatpush3.bf16.msra.mxu1 %v1237_v24 }
  0x14   : > { %v338_v14 = vadd.f32 %v1106_v2, %v327_v7  ;;  %v339_v15 = vadd.f32 %v1106_v2, %v328_v8  ;;  %v340_v16 = vadd.f32 %v1106_v2, %v329_v10  ;;  %1119 = vmatprep.subr.bf16.mxu1 %v1239_v27  ;;  %v1280_v10 = vmov 0.0  }
  0x15   : > { %v341_v18 = vadd.f32 %v1106_v2, %v330_v12  ;;  %v538_v11 = vrot.slane %v1280_v10, 1 }
  0x16   : > { %v342_v19 = vmax.f32 %v338_v14, 0.0  ;;  %v343_v20 = vmax.f32 %v339_v15, 0.0  ;;  %v344_v21 = vmax.f32 %v340_v16, 0.0 }
  0x17   : > { %v345_v23 = vmax.f32 %v341_v18, 0.0  ;;  %1120 = vmatpush3.bf16.msra.mxu1 %v1240_v30 }
  0x18   : > { %v380_v25 = vpack.c.bf16 %v343_v20, %v342_v19  ;;  %1121 = vmatprep.subr.bf16.mxu1 %v1242_v31 }
  0x19   : > { %v381_v26 = vpack.c.bf16 %v345_v23, %v344_v21 }
  0x1a   : > { %1165 = vmatprep.subr.bf16.mxu0 %v380_v25 }
  0x1b   : > { %1166 = vmatpush3.bf16.msra.mxu0 %v380_v25  ;;  %1122 = vmatpush3.bf16.msra.mxu1 %v1243_v34 }
  0x1c   : > { %1167 = vmatprep.subr.bf16.mxu0 %v381_v26  ;;  %1123 = vmatprep.subr.bf16.mxu1 %v1245_v35 }
  0x1f   : > { %1168 = vmatpush3.bf16.msra.mxu0 %v381_v26  ;;  %1124 = vmatpush3.bf16.msra.mxu1 %v1246_v37 }
  0x20   : > { %1177 = vmatprep.subr.bf16.mxu0 %v1235_v28  ;;  %1125 = vmatprep.subr.bf16.mxu1 %v1248_v41 }
  0x22   : > { %1170 = vmatmul.mubr.msk.bf16.vlgmr.msra.gmra.mrb[0].mxu0 %vm402_vm0, %v1228_v29 }
  0x23   : > { %1173 = vmatprep.mubr.msk.bf16.mxu0 %vm402_vm0, %v1229_v32  ;;  %1178 = vmatpush3.bf16.msra.mxu0 %v1235_v28 }
  0x24   : > { %1179 = vmatprep.subr.bf16.mxu0 %v1238_v33  ;;  %1126 = vmatpush3.bf16.msra.mxu1 %v1249_v42  ;;  %v1458_v42 = vld [vmem:[%s1498_s2] ss:$0 sm:$0xff] }
  0x25   : > { %1127 = vmatprep.subr.bf16.mxu1 %v1251_v44 }
  0x27   : > { %1180 = vmatpush3.bf16.msra.mxu0 %v1238_v33 }
  0x28   : > { %1181 = vmatprep.subr.bf16.mxu0 %v1241_v36  ;;  %1128 = vmatpush3.bf16.msra.mxu1 %v1252_v45 }
  0x2a   : > { %1174 = vmatmul.mubr.msk.bf16.gmra.mrb[4].mxu0 %vm402_vm0, %v1230_v38 }
  0x2b   : > { %1182 = vmatpush3.bf16.msra.mxu0 %v1241_v36 }
  0x2c   : > { %1183 = vmatprep.subr.bf16.mxu0 %v1244_v39 }
  0x2f   : > { %1184 = vmatpush3.bf16.msra.mxu0 %v1244_v39 }
  0x30   : > { %1185 = vmatprep.subr.bf16.mxu0 %v1247_v40 }
  0x33   : > { %1186 = vmatpush3.bf16.msra.mxu0 %v1247_v40 }
  0x34   : > { %1187 = vmatprep.subr.bf16.mxu0 %v1250_v43 }
  0x37   : > { %1188 = vmatpush3.bf16.msra.mxu0 %v1250_v43 }
  0x38   : > { %1189 = vmatprep.subr.bf16.mxu0 %v1253_v46 }
  0x3b   : > { %1190 = vmatpush3.bf16.msra.mxu0 %v1253_v46 }
  0x3c   : > { %1191 = vmatprep.subr.bf16.mxu0 %v1254_v47 }
  0x3f   : > { %1192 = vmatpush3.bf16.msra.mxu0 %v1254_v47 }
  0xf5   : > { %v1171_v48 = vpop.f32.mrb[0].mxu0 }
  0xf6   : > { %v449_v49 = vpop.f32.mrb[1].mxu0  ;;  %v492_v50 = vrot.slane %v1171_v48, 7  ;;  %v517_v51 = vrot.slane %v1171_v48, 1 }
  0xf7   : > { %v1172_v52 = vpop.f32.mrb[2].mxu0  ;;  %v489_v53 = vrot.slane %v449_v49, 7  ;;  %v514_v58 = vrot.slane %v449_v49, 1 }
  0xf8   : > { %v494_v54 = vrot.slane %v1172_v52, 7  ;;  %v519_v55 = vrot.slane %v1172_v52, 1  ;;  %v545_v56 = vpack.c.bf16 %v1172_v52, %v1171_v48  ;;  %v452_v57 = vpop.f32.mrb[3].mxu0 }
  0xf9   : > { %v490_v59 = vrot.slane %v452_v57, 7  ;;  %v515_v60 = vrot.slane %v452_v57, 1  ;;  %v542_v61 = vpack.c.bf16 %v452_v57, %v449_v49 }
  0xfa   : > { %v520_v62 = vsel %vm513_vm1, %v517_v51, %v519_v55  ;;  %v495_v63 = vsel %vm488_vm2, %v492_v50, %v494_v54 }
  0xfb   : > { %v491_v0 = vsel %vm488_vm2, %v489_v53, %v490_v59  ;;  %784 = vmatprep.mubr.bf16.mxu1 %v542_v61  ;;  %v516_v1 = vsel %vm513_vm1, %v514_v58, %v515_v60  ;;  %v518_v2 = vsel %vm513_vm1, %v515_v60, %v517_v51  ;;  %v493_v3 = vsel %vm488_vm2, %v490_v59, %v492_v50 }
  0xfc   : > { %v1099_v4 = vpack.c.bf16 %v491_v0, %v489_v53  ;;  %v543_v5 = vpack.c.bf16 %v518_v2, %v516_v1  ;;  %v544_v6 = vpack.c.bf16 %v495_v63, %v493_v3 }
  0xfd   : > { %v1175_v7 = vpop.f32.mrb[4].mxu0 }
  0xfe   : > { %v525_v8 = vrot.slane %v1175_v7, 1  ;;  %v465_v9 = vpop.f32.mrb[5].mxu0  ;;  %1100 = vmatmul.mubr.msk.bf16.vlgmr.msra.gmra.mrb[0].mxu1 %vm1098_vm5, %v1099_v4  ;;  %1193 = vmatprep.mubr.bf16.mxu0 %v543_v5  ;;  %v500_v15 = vrot.slane %v1175_v7, 7 }
  0xff   : > { %v496_v12 = vrot.slane %v465_v9, 7  ;;  %v521_v13 = vrot.slane %v465_v9, 1  ;;  %v1176_v14 = vpop.f32.mrb[6].mxu0  ;;  %792 = vmatprep.mubr.bf16.mxu1 %v545_v56 }
 0x100   : > { %v502_v16 = vrot.slane %v1176_v14, 7  ;;  %v527_v17 = vrot.slane %v1176_v14, 1  ;;  %v551_v18 = vpack.c.bf16 %v1176_v14, %v1175_v7  ;;  %v468_v19 = vpop.f32.mrb[7].mxu0 }
 0x101   : > { %v522_v20 = vsel %vm513_vm1, %v519_v55, %v521_v13  ;;  %v498_v21 = vrot.slane %v468_v19, 7  ;;  %v523_v22 = vrot.slane %v468_v19, 1  ;;  %v548_v23 = vpack.c.bf16 %v468_v19, %v465_v9 }
 0x102   : > { %v546_v24 = vpack.c.bf16 %v522_v20, %v520_v62  ;;  %v528_v25 = vsel %vm513_vm1, %v525_v8, %v527_v17  ;;  %v540_v26 = vsel %vm513_vm1, %v527_v17, %v538_v11  ;;  %v497_v27 = vsel %vm488_vm2, %v494_v54, %v496_v12 }
 0x103   : > { %v524_v28 = vsel %vm513_vm1, %v521_v13, %v523_v22  ;;  %v526_v29 = vsel %vm513_vm1, %v523_v22, %v525_v8  ;;  %v552_v30 = vpack.c.bf16 %v540_v26, %v528_v25  ;;  %v499_v31 = vsel %vm488_vm2, %v496_v12, %v498_v21 }
 0x104   : > { %1194 = vmatmul.mubr.bf16.vlgmr.msra.gmra.mrb[8].mxu0 %v546_v24  ;;  %v549_v32 = vpack.c.bf16 %v526_v29, %v524_v28  ;;  %v547_v33 = vpack.c.bf16 %v499_v31, %v497_v27  ;;  %v501_v34 = vsel %vm488_vm2, %v498_v21, %v500_v15  ;;  %v503_v35 = vsel %vm488_vm2, %v500_v15, %v502_v16 }
 0x105   : > { %v550_v36 = vpack.c.bf16 %v503_v35, %v501_v34 }
 0x106   : > { %793 = vmatmul.mubr.bf16.gmra.mrb[4].mxu1 %v544_v6  ;;  %1197 = vmatprep.mubr.bf16.mxu0 %v549_v32 }
 0x107   : > { %800 = vmatprep.mubr.bf16.mxu1 %v548_v23 }
 0x10c   : > { %1198 = vmatmul.mubr.bf16.gmra.mrb[12].mxu0 %v552_v30 }
 0x10e   : > { %801 = vmatmul.mubr.bf16.gmra.mrb[8].mxu1 %v547_v33 }
 0x10f   : > { %808 = vmatprep.mubr.bf16.mxu1 %v551_v18 }
 0x116   : > { %809 = vmatmul.mubr.bf16.gmra.mrb[12].mxu1 %v550_v36 }
 0x1d1   : > { %v1129_v37 = vpop.f32.mrb[0].mxu1 }
 0x1d2   : > { %v1130_v38 = vpop.f32.mrb[1].mxu1 }
 0x1d3   : > { %v1131_v39 = vadd.f32 %v1130_v38, %v1129_v37  ;;  %v1132_v40 = vpop.f32.mrb[2].mxu1 }
 0x1d4   : > { %v1133_v41 = vpop.f32.mrb[3].mxu1 }
 0x1d5   : > { %v1134_v43 = vadd.f32 %v1133_v41, %v1132_v40  ;;  %v787_v45 = vadd.f32 %v1131_v39, %v1458_v42 }
 0x1d7   : > { %v1195_v44 = vpop.f32.mrb[8].mxu0  ;;  %v790_v50 = vadd.f32 %v1134_v43, %v1458_v42 }
 0x1d8   : > { %v851_v46 = vpop.f32.mrb[9].mxu0 }
 0x1d9   : > { %v852_v47 = vadd.f32 %v851_v46, %v787_v45  ;;  %v1135_v48 = vpop.f32.mrb[4].mxu1  ;;  %v1196_v49 = vpop.f32.mrb[10].mxu0 }
 0x1da   : > { %v1136_v51 = vpop.f32.mrb[5].mxu1  ;;  %v854_v52 = vpop.f32.mrb[11].mxu0 }
 0x1db   : > { %882 = vst [vmem:[%s1465_s17] sm:$0xff] %v852_v47  ;;  %v1137_v53 = vadd.f32 %v1136_v51, %v1135_v48  ;;  %v855_v54 = vadd.f32 %v854_v52, %v790_v50  ;;  %v1138_v55 = vpop.f32.mrb[6].mxu1  ;;  %v903_v56 = vmul.f32 %v852_v47, %v852_v47 }
 0x1dc   : > { %v1139_v57 = vpop.f32.mrb[7].mxu1 }
 0x1dd   : > { %v795_v58 = vadd.f32 %v1137_v53, %v1458_v42  ;;  %883 = vst [vmem:[%s1465_s17 + $0x8] sm:$0xff] %v855_v54  ;;  %v890_v59 = vadd.f32 %v855_v54, %v852_v47  ;;  %v904_v60 = vmul.f32 %v855_v54, %v855_v54  ;;  %v1140_v61 = vadd.f32 %v1139_v57, %v1138_v55 }
 0x1df   : > { %v860_v62 = vadd.f32 %v1195_v44, %v795_v58  ;;  %v911_v63 = vadd.f32 %v904_v60, %v903_v56  ;;  %v798_v0 = vadd.f32 %v1140_v61, %v1458_v42  ;;  %v1199_v1 = vpop.f32.mrb[12].mxu0 }
 0x1e0   : > { %v867_v2 = vpop.f32.mrb[13].mxu0 }
 0x1e1   : > { %884 = vst [vmem:[%s1465_s17 + $0x10] sm:$0xff] %v860_v62  ;;  %v905_v3 = vmul.f32 %v860_v62, %v860_v62  ;;  %v891_v4 = vadd.f32 %v890_v59, %v860_v62  ;;  %v863_v5 = vadd.f32 %v1196_v49, %v798_v0  ;;  %v1141_v6 = vpop.f32.mrb[8].mxu1  ;;  %v1200_v7 = vpop.f32.mrb[14].mxu0 }
 0x1e2   : > { %v1142_v8 = vpop.f32.mrb[9].mxu1  ;;  %v870_v9 = vpop.f32.mrb[15].mxu0 }
 0x1e3   : > { %v912_v10 = vadd.f32 %v911_v63, %v905_v3  ;;  %885 = vst [vmem:[%s1465_s17 + $0x18] sm:$0xff] %v863_v5  ;;  %v892_v11 = vadd.f32 %v891_v4, %v863_v5  ;;  %v906_v12 = vmul.f32 %v863_v5, %v863_v5  ;;  %v1143_v13 = vadd.f32 %v1142_v8, %v1141_v6  ;;  %v1144_v14 = vpop.f32.mrb[10].mxu1 }
 0x1e4   : > { %v1145_v15 = vpop.f32.mrb[11].mxu1 }
 0x1e5   : > { %v913_v16 = vadd.f32 %v912_v10, %v906_v12  ;;  %v803_v17 = vadd.f32 %v1143_v13, %v1458_v42  ;;  %v1146_v18 = vadd.f32 %v1145_v15, %v1144_v14 }
 0x1e7   : > { %v868_v19 = vadd.f32 %v867_v2, %v803_v17  ;;  %v806_v20 = vadd.f32 %v1146_v18, %v1458_v42 }
 0x1e9   : > { %886 = vst [vmem:[%s1465_s17 + $0x20] sm:$0xff] %v868_v19  ;;  %v893_v21 = vadd.f32 %v892_v11, %v868_v19  ;;  %v907_v22 = vmul.f32 %v868_v19, %v868_v19  ;;  %v871_v23 = vadd.f32 %v870_v9, %v806_v20  ;;  %v1147_v24 = vpop.f32.mrb[12].mxu1 }
 0x1ea   : > { %v1148_v25 = vpop.f32.mrb[13].mxu1 }
 0x1eb   : > { %v914_v26 = vadd.f32 %v913_v16, %v907_v22  ;;  %887 = vst [vmem:[%s1465_s17 + $0x28] sm:$0xff] %v871_v23  ;;  %v894_v27 = vadd.f32 %v893_v21, %v871_v23  ;;  %v908_v28 = vmul.f32 %v871_v23, %v871_v23  ;;  %v1149_v29 = vadd.f32 %v1148_v25, %v1147_v24  ;;  %v1150_v30 = vpop.f32.mrb[14].mxu1 }
 0x1ec   : > { %v1151_v31 = vpop.f32.mrb[15].mxu1 }
 0x1ed   : > { %v915_v32 = vadd.f32 %v914_v26, %v908_v28  ;;  %v811_v33 = vadd.f32 %v1149_v29, %v1458_v42  ;;  %v1152_v34 = vadd.f32 %v1151_v31, %v1150_v30 }
 0x1ef   : > { %v876_v35 = vadd.f32 %v1199_v1, %v811_v33  ;;  %v814_v36 = vadd.f32 %v1152_v34, %v1458_v42 }
 0x1f1   : > { %888 = vst [vmem:[%s1465_s17 + $0x30] sm:$0xff] %v876_v35  ;;  %v895_v37 = vadd.f32 %v894_v27, %v876_v35  ;;  %v909_v38 = vmul.f32 %v876_v35, %v876_v35  ;;  %v879_v39 = vadd.f32 %v1200_v7, %v814_v36 }
 0x1f3   : > { %v916_v40 = vadd.f32 %v915_v32, %v909_v38  ;;  %889 = vst [vmem:[%s1465_s17 + $0x38] sm:$0xff] %v879_v39  ;;  %v896_v41 = vadd.f32 %v895_v37, %v879_v39  ;;  %v910_v43 = vmul.f32 %v879_v39, %v879_v39 }
 0x1f5   : > { %v897_v44 = vrot.slane %v896_v41, 4  ;;  %v917_v45 = vadd.f32 %v916_v40, %v910_v43 }
 0x1f7   : > { %v898_v46 = vadd.f32 %v897_v44, %v896_v41  ;;  %v918_v47 = vrot.slane %v917_v45, 4 }
 0x1f9   : > { %v899_v48 = vrot.slane %v898_v46, 2  ;;  %v919_v49 = vadd.f32 %v918_v47, %v917_v45 }
 0x1fb   : > { %v900_v50 = vadd.f32 %v899_v48, %v898_v46  ;;  %v920_v51 = vrot.slane %v919_v49, 2 }
 0x1fd   : > { %v901_v52 = vrot.slane %v900_v50, 1  ;;  %v921_v53 = vadd.f32 %v920_v51, %v919_v49 }
 0x1ff   : > { %v922_v42 = vrot.slane %v921_v53, 1  ;;  %v902_v54 = vadd.f32 %v901_v52, %v900_v50 }
 0x201   : > { %v923_v55 = vadd.f32 %v922_v42, %v921_v53 }
 0x203   : > { %v924_v56 = vsel %vm488_vm2, %v902_v54, %v923_v55 }
 0x204   : > { %929 = vst [vmem:[%s312_s21] sm:$0x3] %v924_v56 }
 0x205 PF: > { %s18_s26 = sadd.s32 1, %s1277_s26   ;;  %s1504_s24 = smov %s1273_s25 }
 0x206   : > { %p15_p5 = scmp.ge.s32.totalorder %s18_s26, 4   ;;  %s1505_s25 = smov %s1507_s27 }
 0x208   :  { %17 = sbr.rel (!%p15_p5) target bundleno = 2 (0x2), region = 97 }

// kernel: vae_forward.11
= control target key start
LH: loop header
LB: loop body
LE: loop exit
PB: predicated region body
PF: predicated region fallthrough
CT: control target
= control target key end

     0   :  { %12 = vsyncpa [#allocation3], 0  ;;  %s1532_s0 = inlined_call_operand.vmem [shape: f32[2,64,128], index: 0, kind: input, shape index: {}]   ;;  %s1533_s1 = inlined_call_operand.vmem [shape: bf16[384,128], index: 1, kind: input, shape index: {}]   ;;  %s1534_s2 = inlined_call_operand.vmem [shape: f32[1,128], index: 2, kind: input, shape index: {}]   ;;  %s1535_s3 = inlined_call_operand.vmem [shape: f32[1,128], index: 3, kind: input, shape index: {}]   ;;  %s1536_s4 = inlined_call_operand.vmem [shape: f32[1,128], index: 4, kind: input, shape index: {}]   ;;  %s1537_s5 = inlined_call_operand.vmem [shape: f32[2,64,128], index: 5, kind: output, shape index: {0}]   ;;  %s1538_s6 = inlined_call_operand.hbm [shape: f32[2,2,128], index: 6, kind: output, shape index: {1}]  }
   0x1   :  { %14 = vsyncpa [#allocation3 + $0x1], 0  ;;  %s1276_s21 = smov 0   ;;  %s1278_s22 = smov 0  }
   0x2   :  { %s1280_s23 = smov 0   ;;  %s1282_s24 = smov 0  }
   0x3   :  { %s1284_s25 = smov 0   ;;  %s1286_s26 = smov 0  }
   0x4 LB: > { %s953_s27 = sadd.s32 4294967295, %s1236_s26   ;;  %s954_s28 = sadd.s32 4294967294, %s1236_s26   ;;  %s1236_s26 = sphi %s1286_s26, %s20_s26   ;;  %s1232_s25 = sphi %s1284_s25, %s1547_s25   ;;  %s1228_s24 = sphi %s1282_s24, %s1546_s24   ;;  %s1224_s23 = sphi %s1280_s23, %s1545_s23   ;;  %s1220_s22 = sphi %s1278_s22, %s1544_s22   ;;  %s1216_s21 = sphi %s1276_s21, %s1543_s21  }
   0x5   : > { %s32_s29 = sadd.s32 1, %s1232_s25  ;;  %s177_s30 = sadd.s32 1, %s1224_s23 }
   0x6   : > { %p34_p0 = scmp.ge.s32.totalorder %s32_s29, 2  ;;  %p187_p1 = scmp.ne.s32.totalorder %s1224_s23, %s1220_s22 }
   0x7   : > { %p188_p2 = scmp.eq.s32.totalorder %s953_s27, 1  ;;  %p193_p3 = scmp.ne.s32.totalorder %s1220_s22, %s1216_s21 }
   0x8   : > { %s1549_s29 = smov (%p34_p0, %s32_s29), 0  ;;  %p194_p5 = scmp.eq.s32.totalorder %s954_s28, 1 }
   0x9   : > { %p1316_p4 = por %p188_p2, %p187_p1  ;;  %s174_s8 = ssub.s32 %s1232_s25, %s1549_s29 }
   0xa   : > { %p957_p6 = scmp.ge.s32.totalorder %s1236_s26, 1  ;;  %p175_p7 = scmp.eq.s32.totalorder %s174_s8, 0 }
   0xb   : > { %p1323_p8 = por %p194_p5, %p193_p3  ;;  %p232_p9 = scmp.lt.s32.totalorder %s1236_s26, 3 }
   0xc   : > { %s1329_s10 = scalar_select %p175_p7, %s1224_s23, %s177_s30  }
   0xd   : > { %p233_p10 = pnand %p957_p6, %p232_p9 }
   0xe   : > { %v1134_v0 = vld [vmem:[%s1533_s1 + $0x40] sm:$0xff] (!%p233_p10)   ;;  %v1136_v2 = vld [vmem:[%s1533_s1 + $0x48] sm:$0xff] (!%p233_p10)   ;;  %v1139_v5 = vld [vmem:[%s1533_s1 + $0x50] sm:$0xff] (!%p233_p10)   ;;  %p271_p11 = scmp.lt.s32.totalorder (!%p233_p10), %s1228_s24, 1  ;;  %vm369_vm0 = vcmask (!%p233_p10), 1040384   ;;  %vm394_vm1 = vcmask (!%p233_p10), 1046528  }
   0xf   : > { %236 = sbr.rel (%p233_p10) target bundleno = 323 (0x143), region = 40  ;;  %v1135_v1 = vld [vmem:[%s1533_s1] sm:$0xff] (!%p233_p10)   ;;  %1001 = vmatprep.subr.bf16.mxu0 (!%p233_p10), %v1134_v0  ;;  %v1138_v4 = vld [vmem:[%s1533_s1 + $0x8] sm:$0xff] (!%p233_p10)   ;;  %v1141_v7 = vld [vmem:[%s1533_s1 + $0x10] sm:$0xff] (!%p233_p10)   ;;  %vm1238_vm3 = vmmov (!%p233_p10), 1   ;;  %s994_s27 = sshll.u32 (!%p233_p10), %s1228_s24, 5 }
  0x10   : > { %1002 = vmatpush3.bf16.msra.mxu0 (!%p233_p10), %v1135_v1  ;;  %v1137_v3 = vld [vmem:[%s1533_s1 + $0x80] sm:$0xff] (!%p233_p10)   ;;  %v1140_v6 = vld [vmem:[%s1533_s1 + $0x88] sm:$0xff] (!%p233_p10)   ;;  %v1142_v8 = vld [vmem:[%s1533_s1 + $0x58] sm:$0xff] (!%p233_p10)   ;;  %s1484_s14 = scalar_lea.hbm (!%p233_p10), %s1538_s6, %s994_s27 }
  0x11   : > { %1003 = vmatprep.subr.bf16.mxu0 (!%p233_p10), %v1136_v2  ;;  %1053 = vmatprep.subr.bf16.mxu1 (!%p233_p10), %v1137_v3  ;;  %v1143_v9 = vld [vmem:[%s1533_s1 + $0x90] sm:$0xff] (!%p233_p10)   ;;  %v1144_v10 = vld [vmem:[%s1533_s1 + $0x18] sm:$0xff] (!%p233_p10)   ;;  %v1145_v11 = vld [vmem:[%s1533_s1 + $0x60] sm:$0xff] (!%p233_p10)  }
  0x12   : > { %1054 = vmatpush3.bf16.msra.mxu1 (!%p233_p10), %v1137_v3  ;;  %v1146_v12 = vld [vmem:[%s1533_s1 + $0x98] sm:$0xff] (!%p233_p10)   ;;  %v1147_v13 = vld [vmem:[%s1533_s1 + $0x20] sm:$0xff] (!%p233_p10)   ;;  %v1148_v15 = vld [vmem:[%s1533_s1 + $0x68] sm:$0xff] (!%p233_p10)  }
  0x13   : > { %1055 = vmatprep.subr.bf16.mxu1 (!%p233_p10), %v1140_v6  ;;  %v1149_v14 = vld [vmem:[%s1533_s1 + $0xa0] sm:$0xff] (!%p233_p10)   ;;  %v1150_v16 = vld [vmem:[%s1533_s1 + $0x28] sm:$0xff] (!%p233_p10)   ;;  %v1151_v18 = vld [vmem:[%s1533_s1 + $0x70] sm:$0xff] (!%p233_p10)  }
  0x14   : > { %1004 = vmatpush3.bf16.msra.mxu0 (!%p233_p10), %v1138_v4  ;;  %v1152_v17 = vld [vmem:[%s1533_s1 + $0xa8] sm:$0xff] (!%p233_p10)   ;;  %v1153_v19 = vld [vmem:[%s1533_s1 + $0x30] sm:$0xff] (!%p233_p10)   ;;  %v999_v23 = vld [vmem:[%s1535_s3] ss:$0 sm:$0xff] (!%p233_p10) }
  0x15   : > { %1005 = vmatprep.subr.bf16.mxu0 (!%p233_p10), %v1139_v5  ;;  %v1155_v20 = vld [vmem:[%s1533_s1 + $0xb0] sm:$0xff] (!%p233_p10)   ;;  %v1154_v24 = vld [vmem:[%s1533_s1 + $0x78] sm:$0xff] (!%p233_p10)   ;;  %v1000_v27 = vld [vmem:[%s1536_s4] ss:$0 sm:$0xff] (!%p233_p10) }
  0x16   : > { %1056 = vmatpush3.bf16.msra.mxu1 %v1140_v6  ;;  %s1372_s30 = scalar_select %p271_p11, %s1228_s24, 1  ;;  %v1156_v28 = vld [vmem:[%s1533_s1 + $0x38] sm:$0xff]   ;;  %vm1430_vm2 = vmneg %vm369_vm0 }
  0x17   : > { %1057 = vmatprep.subr.bf16.mxu1 %v1143_v9  ;;  %v1157_v29 = vld [vmem:[%s1533_s1 + $0xb8] sm:$0xff]   ;;  %vm990_vm4 = vmpackc.low %vm1238_vm3, %vm1430_vm2  ;;  %s1240_s24 = smov [#allocation2]  }
  0x18   : > { %1006 = vmatpush3.bf16.msra.mxu0 %v1141_v7  ;;  %s997_s16 = sshll.u32 %s1372_s30, 6  ;;  %s268_s30 = sand.u32 1, %s1220_s22  }
  0x19   : > { %1007 = vmatprep.subr.bf16.mxu0 %v1142_v8  ;;  %s1398_s12 = scalar_lea.vmem %s1532_s0, %s997_s16  ;;  %s1462_s20 = scalar_lea.vmem %s1537_s5, %s997_s16 }
  0x1a   : > { %1058 = vmatpush3.bf16.msra.mxu1 %v1143_v9  ;;  %v289_v21 = vld [vmem:[%s1398_s12] sm:$0xff]  ;;  %v290_v22 = vld [vmem:[%s1398_s12 + $0x8] sm:$0xff]  ;;  %v291_v32 = vld [vmem:[%s1398_s12 + $0x10] sm:$0xff]  ;;  %s958_s16 = sshll.u32 %s268_s30, 1  ;;  %s828_s15 = scalar_lea.sflag [#allocation3], %s268_s30 }
  0x1b   : > { %1059 = vmatprep.subr.bf16.mxu1 %v1146_v12  ;;  %v304_v25 = vmul.f32 %v999_v23, %v289_v21  ;;  %v305_v26 = vmul.f32 %v999_v23, %v290_v22  ;;  %v292_v33 = vld [vmem:[%s1398_s12 + $0x18] sm:$0xff]  ;;  %v293_v34 = vld [vmem:[%s1398_s12 + $0x20] sm:$0xff]  ;;  %v306_v35 = vmul.f32 %v999_v23, %v291_v32  ;;  %v294_v38 = vld [vmem:[%s1398_s12 + $0x28] sm:$0xff]  ;;  %s270_s28 = scalar_lea.vmem [#allocation2], %s958_s16  ;;  %s1162_s17 = sshll.u32 %s1240_s24, 4  ;;  %s1163_s17 = int_to_ptr.vmem [resolvable:$false] %s1162_s17 }
  0x1c   : > { %1008 = vmatpush3.bf16.msra.mxu0 %v1144_v10  ;;  %v307_v36 = vmul.f32 %v999_v23, %v292_v33  ;;  %v308_v37 = vmul.f32 %v999_v23, %v293_v34  ;;  %v295_v39 = vld [vmem:[%s1398_s12 + $0x30] sm:$0xff]  ;;  %v296_v40 = vld [vmem:[%s1398_s12 + $0x38] sm:$0xff]  ;;  %v309_v43 = vmul.f32 %v999_v23, %v294_v38  ;;  %s845_s8 = sshll.u32 %s270_s28, 4  ;;  %s1164_s18 = scalar_lea.vmem %s1163_s17, 64  ;;  %s1486_s8 = int_to_ptr.vmem [resolvable:$true] %s845_s8 }
  0x1d   : > { %1009 = vmatprep.subr.bf16.mxu0 %v1145_v11  ;;  %v319_v30 = vadd.f32 %v1000_v27, %v304_v25  ;;  %v320_v31 = vadd.f32 %v1000_v27, %v305_v26  ;;  %v310_v44 = vmul.f32 %v999_v23, %v295_v39  ;;  %v321_v46 = vadd.f32 %v1000_v27, %v306_v35  ;;  %s1158_s12 = scalar_lea.vmem %s1486_s8, 32  ;;  %p1165_p1 = scmp.lt.s32.totalorder %s1486_s8, %s1163_s17 }
  0x1e   : > { %1060 = vmatpush3.bf16.msra.mxu1 %v1146_v12  ;;  %v322_v47 = vadd.f32 %v1000_v27, %v307_v36  ;;  %v323_v48 = vadd.f32 %v1000_v27, %v308_v37  ;;  %v311_v49 = vmul.f32 %v999_v23, %v296_v40  ;;  %v324_v59 = vadd.f32 %v1000_v27, %v309_v43  ;;  %p1159_p12 = scmp.ne.s32.totalorder %s1486_s8, %s1158_s12  ;;  %p1166_p2 = scmp.lt.s32.totalorder %s1164_s18, %s1158_s12 }
  0x1f   : > { %1061 = vmatprep.subr.bf16.mxu1 %v1149_v14  ;;  %v327_v41 = vmax.f32 %v319_v30, 0.0  ;;  %v328_v42 = vmax.f32 %v320_v31, 0.0  ;;  %v329_v54 = vmax.f32 %v321_v46, 0.0  ;;  %v325_v60 = vadd.f32 %v1000_v27, %v310_v44 }
  0x20   : > { %1010 = vmatpush3.bf16.msra.mxu0 %v1147_v13  ;;  %v330_v56 = vmax.f32 %v322_v47, 0.0  ;;  %v331_v57 = vmax.f32 %v323_v48, 0.0  ;;  %v326_v61 = vadd.f32 %v1000_v27, %v311_v49  ;;  %v332_v8 = vmax.f32 %v324_v59, 0.0  ;;  %p1160_p13 = pnand %p1159_p12, %p1316_p4  ;;  %p1167_p3 = por %p1166_p2, %p1165_p1 }
  0x21   : > { %1011 = vmatprep.subr.bf16.mxu0 %v1148_v15  ;;  %v370_v50 = vrot.slane %v327_v41, 7  ;;  %v371_v51 = vrot.slane %v328_v42, 7  ;;  %v423_v52 = vpack.c.bf16 %v328_v42, %v327_v41  ;;  %v395_v53 = vrot.slane %v327_v41, 1 }
  0x22   : > { %1062 = vmatpush3.bf16.msra.mxu1 %v1149_v14  ;;  %v396_v55 = vrot.slane %v328_v42, 1  ;;  %v398_v0 = vrot.slane %v329_v54, 1  ;;  %v400_v1 = vrot.slane %v330_v56, 1  ;;  %v402_v2 = vrot.slane %v331_v57, 1  ;;  %v1454_v42 = vld [vmem:[%s1534_s2] ss:$0 sm:$0xff]  ;;  %p1161_p0 = pneg %p1160_p13 }
  0x23   : > { %1063 = vmatprep.subr.bf16.mxu1 %v1152_v17  ;;  %665 = vmatprep.mubr.bf16.mxu0 %v423_v52  ;;  %v372_v58 = vsel %vm369_vm0, %v370_v50, %v371_v51  ;;  %v426_v3 = vpack.c.bf16 %v330_v56, %v329_v54  ;;  %v373_v4 = vrot.slane %v329_v54, 7  ;;  %v375_v5 = vrot.slane %v330_v56, 7 }
  0x24   : > { %1012 = vmatpush3.bf16.msra.mxu0 %v1150_v16  ;;  %v991_v62 = vpack.c.bf16 %v372_v58, %v370_v50  ;;  %v397_v63 = vsel %vm394_vm1, %v395_v53, %v396_v55  ;;  %v399_v6 = vsel %vm394_vm1, %v396_v55, %v398_v0  ;;  %v401_v7 = vsel %vm394_vm1, %v398_v0, %v400_v1  ;;  %p1168_p5 = pnand %p1167_p3, %p1161_p0 }
  0x25   : > { %1013 = vmatprep.subr.bf16.mxu0 %v1151_v18  ;;  %v424_v9 = vpack.c.bf16 %v399_v6, %v397_v63  ;;  %v403_v10 = vsel %vm394_vm1, %v400_v1, %v402_v2  ;;  %v374_v11 = vsel %vm369_vm0, %v371_v51, %v373_v4  ;;  %v376_v12 = vsel %vm369_vm0, %v373_v4, %v375_v5 }
  0x26   : > { %1064 = vmatpush3.bf16.msra.mxu1 %v1152_v17  ;;  %v427_v13 = vpack.c.bf16 %v403_v10, %v401_v7  ;;  %v333_v14 = vmax.f32 %v325_v60, 0.0  ;;  %v404_v15 = vrot.slane %v332_v8, 1  ;;  %v334_v16 = vmax.f32 %v326_v61, 0.0 }
  0x27   : > { %1065 = vmatprep.subr.bf16.mxu1 %v1155_v20  ;;  %1069 = vmatprep.mubr.bf16.mxu1 %v424_v9  ;;  %v1239_v17 = vmov 0.0   ;;  %v377_v21 = vrot.slane %v331_v57, 7  ;;  %v379_v22 = vrot.slane %v332_v8, 7 }
  0x28   : > { %1014 = vmatpush3.bf16.msra.mxu0 %v1153_v19  ;;  %v419_v18 = vrot.slane %v1239_v17, 1  ;;  %v425_v19 = vpack.c.bf16 %v376_v12, %v374_v11  ;;  %v405_v23 = vsel %vm394_vm1, %v402_v2, %v404_v15  ;;  %v408_v25 = vrot.slane %v334_v16, 1 }
  0x29   : > { %1015 = vmatprep.subr.bf16.mxu0 %v1154_v24  ;;  %v406_v24 = vrot.slane %v333_v14, 1  ;;  %v378_v31 = vsel %vm369_vm0, %v375_v5, %v377_v21  ;;  %v380_v32 = vsel %vm369_vm0, %v377_v21, %v379_v22  ;;  %v432_v34 = vpack.c.bf16 %v334_v16, %v333_v14 }
  0x2a   : > { %1066 = vmatpush3.bf16.msra.mxu1 %v1155_v20  ;;  %v429_v20 = vpack.c.bf16 %v332_v8, %v331_v57  ;;  %v428_v33 = vpack.c.bf16 %v380_v32, %v378_v31  ;;  %v381_v35 = vrot.slane %v333_v14, 7  ;;  %v383_v36 = vrot.slane %v334_v16, 7 }
  0x2b   : > { %1067 = vmatprep.subr.bf16.mxu1 %v1157_v29  ;;  %v407_v26 = vsel %vm394_vm1, %v404_v15, %v406_v24  ;;  %v409_v27 = vsel %vm394_vm1, %v406_v24, %v408_v25 }
  0x2c   : > { %1016 = vmatpush3.bf16.msra.mxu0 %v1156_v28  ;;  %v421_v28 = vsel %vm394_vm1, %v408_v25, %v419_v18  ;;  %v382_v37 = vsel %vm369_vm0, %v379_v22, %v381_v35  ;;  %v384_v38 = vsel %vm369_vm0, %v381_v35, %v383_v36 }
  0x2d   : > { %v433_v30 = vpack.c.bf16 %v421_v28, %v409_v27  ;;  %v431_v39 = vpack.c.bf16 %v384_v38, %v382_v37 }
  0x2e   : > { %1068 = vmatpush3.bf16.msra.mxu1 %v1157_v29  ;;  %v430_v29 = vpack.c.bf16 %v407_v26, %v405_v23 }
  0x2f   : > { %992 = vmatmul.mubr.msk.bf16.vlgmr.msra.gmra.mrb[0].mxu0 %vm990_vm4, %v991_v62 }
  0x30   : > { %673 = vmatprep.mubr.bf16.mxu0 %v426_v3 }
  0x31   : > { %1070 = vmatmul.mubr.bf16.vlgmr.msra.gmra.mrb[0].mxu1 %v427_v13 }
  0x32   : > { %1073 = vmatprep.mubr.bf16.mxu1 %v430_v29 }
  0x37   : > { %674 = vmatmul.mubr.bf16.gmra.mrb[4].mxu0 %v425_v19 }
  0x38   : > { %681 = vmatprep.mubr.bf16.mxu0 %v429_v20 }
  0x39   : > { %1074 = vmatmul.mubr.bf16.gmra.mrb[4].mxu1 %v433_v30 }
  0x3f   : > { %682 = vmatmul.mubr.bf16.gmra.mrb[8].mxu0 %v428_v33 }
  0x40   : > { %689 = vmatprep.mubr.bf16.mxu0 %v432_v34 }
  0x47   : > { %690 = vmatmul.mubr.bf16.gmra.mrb[12].mxu0 %v431_v39 }
 0x102   : > { %v1017_v40 = vpop.f32.mrb[0].mxu0 }
 0x103   : > { %v1018_v41 = vpop.f32.mrb[1].mxu0 }
 0x104   : > { %v1019_v43 = vadd.f32 %v1018_v41, %v1017_v40  ;;  %v1020_v44 = vpop.f32.mrb[2].mxu0  ;;  %v1071_v47 = vpop.f32.mrb[0].mxu1 }
 0x105   : > { %v1021_v45 = vpop.f32.mrb[3].mxu0  ;;  %v732_v49 = vpop.f32.mrb[1].mxu1 }
 0x106   : > { %v1022_v46 = vadd.f32 %v1021_v45, %v1020_v44  ;;  %v668_v48 = vadd.f32 %v1019_v43, %v1454_v42  ;;  %v1072_v51 = vpop.f32.mrb[2].mxu1 }
 0x107   : > { %v735_v53 = vpop.f32.mrb[3].mxu1 }
 0x108   : > { %v733_v50 = vadd.f32 %v732_v49, %v668_v48  ;;  %v671_v52 = vadd.f32 %v1022_v46, %v1454_v42 }
 0x10a   : > { %763 = vst [vmem:[%s1462_s20] sm:$0xff] %v733_v50  ;;  %v736_v54 = vadd.f32 %v735_v53, %v671_v52  ;;  %v1023_v55 = vpop.f32.mrb[4].mxu0  ;;  %v784_v57 = vmul.f32 %v733_v50, %v733_v50 }
 0x10b   : > { %v1024_v56 = vpop.f32.mrb[5].mxu0 }
 0x10c   : > { %764 = vst [vmem:[%s1462_s20 + $0x8] sm:$0xff] %v736_v54  ;;  %v771_v58 = vadd.f32 %v736_v54, %v733_v50  ;;  %v785_v59 = vmul.f32 %v736_v54, %v736_v54  ;;  %v1025_v60 = vadd.f32 %v1024_v56, %v1023_v55  ;;  %v1026_v61 = vpop.f32.mrb[6].mxu0  ;;  %v1075_v2 = vpop.f32.mrb[4].mxu1 }
 0x10d   : > { %v1027_v62 = vpop.f32.mrb[7].mxu0  ;;  %v748_v3 = vpop.f32.mrb[5].mxu1 }
 0x10e   : > { %v792_v63 = vadd.f32 %v785_v59, %v784_v57  ;;  %v676_v0 = vadd.f32 %v1025_v60, %v1454_v42  ;;  %v1028_v1 = vadd.f32 %v1027_v62, %v1026_v61  ;;  %v1076_v6 = vpop.f32.mrb[6].mxu1 }
 0x10f   : > { %v751_v7 = vpop.f32.mrb[7].mxu1 }
 0x110   : > { %v741_v4 = vadd.f32 %v1071_v47, %v676_v0  ;;  %v679_v5 = vadd.f32 %v1028_v1, %v1454_v42 }
 0x112   : > { %765 = vst [vmem:[%s1462_s20 + $0x10] sm:$0xff] %v741_v4  ;;  %v786_v8 = vmul.f32 %v741_v4, %v741_v4  ;;  %v744_v9 = vadd.f32 %v1072_v51, %v679_v5  ;;  %v1029_v10 = vpop.f32.mrb[8].mxu0  ;;  %v772_v11 = vadd.f32 %v771_v58, %v741_v4 }
 0x113   : > { %v1030_v12 = vpop.f32.mrb[9].mxu0 }
 0x114   : > { %766 = vst [vmem:[%s1462_s20 + $0x18] sm:$0xff] %v744_v9  ;;  %v787_v13 = vmul.f32 %v744_v9, %v744_v9  ;;  %v1031_v14 = vadd.f32 %v1030_v12, %v1029_v10  ;;  %v1032_v15 = vpop.f32.mrb[10].mxu0  ;;  %v773_v16 = vadd.f32 %v772_v11, %v744_v9  ;;  %v793_v17 = vadd.f32 %v792_v63, %v786_v8 }
 0x115   : > { %v1033_v18 = vpop.f32.mrb[11].mxu0 }
 0x116   : > { %v1034_v19 = vadd.f32 %v1033_v18, %v1032_v15  ;;  %v684_v20 = vadd.f32 %v1031_v14, %v1454_v42  ;;  %v794_v21 = vadd.f32 %v793_v17, %v787_v13 }
 0x118   : > { %v749_v22 = vadd.f32 %v748_v3, %v684_v20  ;;  %v687_v23 = vadd.f32 %v1034_v19, %v1454_v42 }
 0x11a   : > { %767 = vst [vmem:[%s1462_s20 + $0x20] sm:$0xff] %v749_v22  ;;  %v774_v24 = vadd.f32 %v773_v16, %v749_v22  ;;  %v788_v25 = vmul.f32 %v749_v22, %v749_v22  ;;  %v752_v26 = vadd.f32 %v751_v7, %v687_v23  ;;  %v1035_v27 = vpop.f32.mrb[12].mxu0 }
 0x11b   : > { %v1036_v28 = vpop.f32.mrb[13].mxu0 }
 0x11c   : > { %v795_v29 = vadd.f32 %v794_v21, %v788_v25  ;;  %768 = vst [vmem:[%s1462_s20 + $0x28] sm:$0xff] %v752_v26  ;;  %v775_v30 = vadd.f32 %v774_v24, %v752_v26  ;;  %v789_v31 = vmul.f32 %v752_v26, %v752_v26  ;;  %v1037_v32 = vadd.f32 %v1036_v28, %v1035_v27  ;;  %v1038_v33 = vpop.f32.mrb[14].mxu0 }
 0x11d   : > { %v1039_v34 = vpop.f32.mrb[15].mxu0 }
 0x11e   : > { %v796_v35 = vadd.f32 %v795_v29, %v789_v31  ;;  %v692_v36 = vadd.f32 %v1037_v32, %v1454_v42  ;;  %v1040_v37 = vadd.f32 %v1039_v34, %v1038_v33 }
 0x120   : > { %v757_v38 = vadd.f32 %v1075_v2, %v692_v36  ;;  %v695_v39 = vadd.f32 %v1040_v37, %v1454_v42 }
 0x122   : > { %769 = vst [vmem:[%s1462_s20 + $0x30] sm:$0xff] %v757_v38  ;;  %v776_v40 = vadd.f32 %v775_v30, %v757_v38  ;;  %v790_v41 = vmul.f32 %v757_v38, %v757_v38  ;;  %v760_v43 = vadd.f32 %v1076_v6, %v695_v39 }
 0x124   : > { %v797_v44 = vadd.f32 %v796_v35, %v790_v41  ;;  %770 = vst [vmem:[%s1462_s20 + $0x38] sm:$0xff] %v760_v43  ;;  %v777_v45 = vadd.f32 %v776_v40, %v760_v43  ;;  %v791_v46 = vmul.f32 %v760_v43, %v760_v43 }
 0x126   : > { %v778_v47 = vrot.slane %v777_v45, 4  ;;  %v798_v48 = vadd.f32 %v797_v44, %v791_v46 }
 0x128   : > { %v779_v49 = vadd.f32 %v778_v47, %v777_v45  ;;  %v799_v50 = vrot.slane %v798_v48, 4 }
 0x12a   : > { %v780_v51 = vrot.slane %v779_v49, 2  ;;  %v800_v52 = vadd.f32 %v799_v50, %v798_v48 }
 0x12c   : > { %v781_v53 = vadd.f32 %v780_v51, %v779_v49  ;;  %v801_v54 = vrot.slane %v800_v52, 2 }
 0x12e   : > { %v782_v42 = vrot.slane %v781_v53, 1  ;;  %v802_v55 = vadd.f32 %v801_v54, %v800_v52 }
 0x130   : > { %v803_v56 = vrot.slane %v802_v55, 1  ;;  %v783_v57 = vadd.f32 %v782_v42, %v781_v53 }
 0x132   : > { %v804_v58 = vadd.f32 %v803_v56, %v802_v55 }
 0x134   : > { %v805_v59 = vsel %vm369_vm0, %v783_v57, %v804_v58 }
 0x135   : > { %810 = vst [vmem:[%s270_s28] sm:$0x3] %v805_v59 }
 0x136   : > { %1171 = shalt.err (!%p1168_p5)
}
 0x137   : > { %s1172_s19 = scalar_lea.hbm %s1484_s14, 32  ;;  %s1176_s16 = scalar_lea.hbm %s1538_s6, 64 }
 0x138   : > { %p1173_p6 = scmp.ne.s32.totalorder %s1484_s14, %s1172_s19  ;;  %p1177_p10 = scmp.lt.u32.totalorder %s1484_s14, %s1538_s6 }
 0x139   : > { %p1178_p11 = scmp.lt.u32.totalorder %s1176_s16, %s1172_s19  ;;  %p1180_p13 = scmp.lt.u32.totalorder %s1172_s19, %s1484_s14 }
 0x13a   : > { %p1174_p7 = pnand %p1173_p6, %p1316_p4 }
 0x13b   : > { %p1179_p12 = por %p1178_p11, %p1177_p10 }
 0x13c   : > { %p1175_p9 = pneg %p1174_p7 }
 0x13d   : > { %p1181_p0 = por %p1180_p13, %p1179_p12 }
 0x13f   : > { %p1182_p1 = pnand %p1181_p0, %p1175_p9 }
 0x141   : > { %1185 = shalt.err (!%p1182_p1)
}
 0x142   : > { %1077 = dma.vmem_to_hbm [thread:$0]  (%p1316_p4), %s1486_s8, 32, %s1484_s14, %s828_s15  }
 0x143 PF: > { %p1083_p2 = scmp.ge.s32.totalorder %s1236_s26, 2  ;;  %s869_s11 = sand.u32 1, %s1216_s21  }
 0x144   : > { %s870_s13 = scalar_lea.sflag [#allocation3], %s869_s11 }
 0x145   : > { %p1080_p3 = pnand %p1083_p2, %p1323_p8 }
 0x147   : > { %1211 = dma.done.wait (!%p1080_p3), %s870_s13, 32  }
 0x148   : > { %1213 = vsyncadd (!%p1080_p3), %s870_s13, 4294967264  ;;  %s20_s26 = sadd.s32 1, %s1236_s26   ;;  %s1543_s21 = smov %s1220_s22 }
 0x149   : > { %p17_p5 = scmp.ge.s32.totalorder %s20_s26, 4   ;;  %s1544_s22 = smov %s1224_s23 }
 0x14a   : > { %s1545_s23 = smov %s1329_s10  ;;  %s1546_s24 = smov %s1232_s25 }
 0x14b   : > { %s1547_s25 = smov %s1549_s29  ;;  %19 = sbr.rel (!%p17_p5) target bundleno = 4 (0x4), region = 98 }
 0x152   :  { %875 = vsyncpa [#allocation3], 1 }
 0x153   :  { %877 = vsyncpa [#allocation3 + $0x1], 1 }

</bundles_post_ra>
